<compile_context>
chip_gen: v6e
topology: v6e:2x2x1
jax: 0.10.0
libtpu: 0.0.40
codegen_flags: <defaults>
</compile_context>

<pallas_src>
import numpy as np
import jax
import jax.numpy as jnp
from jax import lax
from jax.experimental import pallas as pl
from jax.experimental.pallas import tpu as pltpu


def character_cnn_kernel(emb_ref, wconv_ref, bconv_ref, mask_ref,
                         fc1w_ref, fc1b_ref, fc2w_ref, fc2b_ref, out_ref):
    TB, L, E = emb_ref.shape
    KE, C = wconv_ref.shape          # KE = fs_max * E (taps stacked in K)
    KW = KE // E
    M = TB * L

    # bf16 (M, E).  L is padded to a multiple of 16 on the host, so this
    # leading-dim merge is free over intact (16, 128) bf16 tiles.
    emb_bf = emb_ref[...].reshape(M, E)

    # im2col along the contraction dim: slab k holds rows shifted up by k,
    # i.e. slab_k[r] = emb[(r + k) mod M].  Sublane rolls of packed bf16 may
    # not lower / may relayout, so roll a f32 copy (XLU slot; still 2x fewer
    # bytes than rolling the f32 (M, C) conv result) and pack back to bf16.
    slabs = [emb_bf]
    if KW > 1:
        emb_f32 = emb_bf.astype(jnp.float32)
        for k in range(1, KW):                                   # static unroll
            slabs.append(
                pltpu.roll(emb_f32, shift=M - k, axis=0).astype(jnp.bfloat16))
    lhs = jnp.concatenate(slabs, axis=1) if KW > 1 else emb_bf   # (M, KW*E)

    # Single stacked-K matmul: K = KW*E (e.g. 640) fills the 256-deep MXU on
    # v6e/v7x; zero-padded taps of shorter filters contribute exact zeros.
    acc = jnp.dot(lhs, wconv_ref[...], preferred_element_type=jnp.float32)
    acc = acc.reshape(TB, L, C)

    # Kill conv positions that would read past a sequence end (or wrap into
    # the next batch row via the roll) with a select, then global max-pool.
    acc = jnp.where(mask_ref[...][None] > 0.0, acc, jnp.float32(-1e30))
    pooled = jnp.max(acc, axis=1)                                # (TB, C)

    # Conv bias + ReLU hoisted after the pool (bias const over time, ReLU
    # monotone -> identical result, ~L x fewer VPU ops).
    pooled = jnp.maximum(pooled + bconv_ref[...], 0.0)

    # fc1 + ReLU: bf16 MXU operands, f32 accumulation, H1 lane-padded to 128.
    h = jnp.dot(pooled.astype(jnp.bfloat16), fc1w_ref[...],
                preferred_element_type=jnp.float32)
    h = jnp.maximum(h + fc1b_ref[...], 0.0)

    # BatchNorm1d (eval, running stats) is pre-folded into fc2 on the host.
    # Dropout(0.5) is identity in eval mode.
    # TODO(synk): training-mode BN batch statistics and dropout RNG mask are
    # not implemented.
    out = jnp.dot(h.astype(jnp.bfloat16), fc2w_ref[...],
                  preferred_element_type=jnp.float32)
    out_ref[...] = out + fc2b_ref[...]


def prepare_params(params, seq_len):
    """One-time host-side prep for eval/inference (reuse across batches)."""
    filter_sizes = tuple(int(w.shape[0]) for w in params['conv_w'])
    fs_max = max(filter_sizes)
    if fs_max > seq_len:
        raise ValueError(
            f"max filter size {fs_max} exceeds sequence length {seq_len}")
    E = int(params['embedding'].shape[1])
    F = int(params['conv_w'][0].shape[2])
    C = F * len(filter_sizes)
    H1 = int(params['fc1_w'].shape[1])
    NC = int(params['fc2_w'].shape[1])

    Lp = pl.cdiv(seq_len, 16) * 16        # bf16 sublane packing: keep L % 16 == 0
    H1P = pl.cdiv(H1, 128) * 128          # lane-dense hidden
    NP = pl.cdiv(NC, 128) * 128           # lane-dense output (unmasked stores)

    # bf16 embedding table (cast once): activation is gathered directly in bf16.
    emb_bf16 = params['embedding'].astype(jnp.bfloat16)

    # Stack filter banks along output channels, zero-pad taps to fs_max, and
    # flatten taps into the contraction dim -> (fs_max*E, C) bf16 RHS.
    w_stack = np.zeros((fs_max, E, C), np.float32)
    for i, w in enumerate(params['conv_w']):
        w_stack[:filter_sizes[i], :, i * F:(i + 1) * F] = np.asarray(w)
    w_stack = jnp.asarray(w_stack.reshape(fs_max * E, C), dtype=jnp.bfloat16)
    b_stack = jnp.concatenate(
        [b.reshape(1, F) for b in params['conv_b']], axis=1)     # (1, C) f32

    # Valid-position mask: 1.0 on conv positions l < L - fs + 1, else 0.0.
    limits = np.repeat(
        np.array([seq_len - fs + 1 for fs in filter_sizes], np.int64), F)
    l_idx = np.arange(Lp)[:, None]
    valid = jnp.asarray((l_idx < limits[None, :]).astype(np.float32))  # (Lp, C)

    # fc1 (lane-padded, bf16 operands; f32 bias / accumulation).
    fc1_w = (jnp.zeros((C, H1P), jnp.float32)
             .at[:, :H1].set(params['fc1_w']).astype(jnp.bfloat16))
    fc1_b = jnp.zeros((1, H1P), jnp.float32).at[0, :H1].set(params['fc1_b'])

    # Fold eval-mode BatchNorm into fc2:  bn(h) = h*s + t.
    s = params['bn_gamma'] * lax.rsqrt(params['bn_var'] + 1e-5)
    t = params['bn_beta'] - params['bn_mean'] * s
    fc2_w_eff = params['fc2_w'] * s[:, None]                     # (H1, NC)
    fc2_b_eff = params['fc2_b'] + t @ params['fc2_w']            # (NC,)
    fc2_w = (jnp.zeros((H1P, NP), jnp.float32)
             .at[:H1, :NC].set(fc2_w_eff).astype(jnp.bfloat16))
    fc2_b = jnp.zeros((1, NP), jnp.float32).at[0, :NC].set(fc2_b_eff)

    return dict(embedding_bf16=emb_bf16, w_conv=w_stack, b_conv=b_stack,
                valid_mask=valid, fc1_w=fc1_w, fc1_b=fc1_b,
                fc2_w=fc2_w, fc2_b=fc2_b,
                seq_len=seq_len, Lp=Lp, E=E, C=C, fs_max=fs_max,
                H1P=H1P, NP=NP, num_classes=NC)


def _pick_batch_tile(B, batch_tile):
    TB = max(1, min(batch_tile, B))
    # Keep >= 2 grid steps when the batch allows it: v7x's two TensorCores
    # both get work (dimension_semantics=("parallel",)) and the emb DMA
    # pipeline has something to overlap.
    if B > 8 and pl.cdiv(B, TB) < 2:
        TB = pl.cdiv(B, 2)
    if TB < B:
        TB = pl.cdiv(TB, 8) * 8          # out tile (TB, NP): 8-row alignment
    return TB


def character_cnn_forward(token_ids, prepped, *, batch_tile=128):
    # VMEM/step ~ TB*L*(E*2 dbl-buffered emb + (KW+1)*E*2 lhs + ~3*C*4 f32
    # temporaries) ~= 72 KiB * TB at L=16 -> TB=128 ~ 9 MiB, TB=256 ~ 18 MiB.
    # Stays under the 32 MiB scoped limit, which is safe for v7x's 64 MiB
    # physical VMEM; v5e/v6e (128 MiB) have room to push batch_tile to 256+.
    B, L = token_ids.shape
    if L != prepped['seq_len']:
        raise ValueError("token_ids seq length does not match prepare_params")
    Lp, E, C = prepped['Lp'], prepped['E'], prepped['C']
    KW, H1P, NP = prepped['fs_max'], prepped['H1P'], prepped['NP']

    TB = _pick_batch_tile(B, batch_tile)
    Bp = pl.cdiv(B, TB) * TB
    grid = (Bp // TB,)

    ids = token_ids.astype(jnp.int32)
    if Bp != B or Lp != L:
        # Pad token ids; padded positions gather embedding row 0 (finite) and
        # are either masked (time pad) or sliced off (batch pad).
        ids = jnp.pad(ids, ((0, Bp - B), (0, Lp - L)))

    # Fused bf16 gather: the (Bp, Lp, E) activation is materialized exactly
    # once, in bf16 (no f32 write + cast + bf16 rewrite).
    # TODO(synk): fuse the gather into the kernel (scalar-prefetch token_ids +
    # manual HBM DMA of embedding rows) so it is never materialized at all.
    emb = jnp.take(prepped['embedding_bf16'], ids, axis=0)       # (Bp, Lp, E)

    flops = 2 * Bp * Lp * (KW * E) * C + 2 * Bp * (C * H1P + H1P * NP)
    bytes_accessed = (emb.size * 2 + Bp * NP * 4
                      + prepped['w_conv'].size * 2
                      + (prepped['fc1_w'].size + prepped['fc2_w'].size) * 2)

    const2 = lambda i: (0, 0)
    out = pl.pallas_call(
        character_cnn_kernel,
        out_shape=jax.ShapeDtypeStruct((Bp, NP), jnp.float32),
        grid_spec=pltpu.PrefetchScalarGridSpec(
            num_scalar_prefetch=0,
            grid=grid,
            in_specs=[
                pl.BlockSpec((TB, Lp, E), lambda i: (i, 0, 0)),    # emb (tiled)
                pl.BlockSpec((KW * E, C), const2),                 # stacked conv w
                pl.BlockSpec((1, C), const2),                      # stacked conv b
                pl.BlockSpec((Lp, C), const2),                     # valid mask
                pl.BlockSpec((C, H1P), const2),                    # fc1 w (bf16)
                pl.BlockSpec((1, H1P), const2),                    # fc1 b
                pl.BlockSpec((H1P, NP), const2),                   # fc2 w (BN folded)
                pl.BlockSpec((1, NP), const2),                     # fc2 b (BN folded)
            ],
            out_specs=pl.BlockSpec((TB, NP), lambda i: (i, 0)),
        ),
        compiler_params=pltpu.CompilerParams(
            dimension_semantics=("parallel",),     # batch axis -> v7x dual-TC
            vmem_limit_bytes=32 * 1024 * 1024),
        cost_estimate=pl.CostEstimate(flops=int(flops), transcendentals=0,
                                      bytes_accessed=int(bytes_accessed)),
    )(emb, prepped['w_conv'], prepped['b_conv'], prepped['valid_mask'],
      prepped['fc1_w'], prepped['fc1_b'], prepped['fc2_w'], prepped['fc2_b'])

    return out[:B, :prepped['num_classes']]


def init_params(key, *, num_classes, embed_size, filter_sizes, filter_num,
                vocab_size=65535):
    ks = list(jax.random.split(key, 32))
    nxt = iter(ks)

    params = {}
    params['embedding'] = jax.random.normal(
        next(nxt), (vocab_size, embed_size), jnp.float32) * 0.05

    conv_w, conv_b = [], []
    for fs in filter_sizes:
        conv_w.append(jax.random.normal(
            next(nxt), (fs, embed_size, filter_num), jnp.float32) * 0.05)
        conv_b.append(jax.random.normal(
            next(nxt), (filter_num,), jnp.float32) * 0.05)
    params['conv_w'] = conv_w
    params['conv_b'] = conv_b

    fc1_in = filter_num * len(filter_sizes)
    params['fc1_w'] = jax.random.normal(next(nxt), (fc1_in, 64), jnp.float32) * 0.05
    params['fc1_b'] = jax.random.normal(next(nxt), (64,), jnp.float32) * 0.05

    # BatchNorm1d(64) — non-trivial running stats to exercise the fold.
    params['bn_gamma'] = 1.0 + 0.1 * jax.random.normal(next(nxt), (64,), jnp.float32)
    params['bn_beta'] = 0.1 * jax.random.normal(next(nxt), (64,), jnp.float32)
    params['bn_mean'] = 0.1 * jax.random.normal(next(nxt), (64,), jnp.float32)
    params['bn_var'] = 1.0 + 0.5 * jnp.abs(
        jax.random.normal(next(nxt), (64,), jnp.float32))

    params['fc2_w'] = jax.random.normal(next(nxt), (64, num_classes), jnp.float32) * 0.05
    params['fc2_b'] = jax.random.normal(next(nxt), (num_classes,), jnp.float32) * 0.05
    return params


def reference_forward(token_ids, params):
    """Pure-JAX f32 reference (PyTorch NCL conv semantics, explicit eval BN)."""
    emb = jnp.take(params['embedding'], token_ids, axis=0)        # (B, L, E)
    x_ncl = jnp.transpose(emb, (0, 2, 1))                         # (B, E, L)
    pooled = []
    for w, b in zip(params['conv_w'], params['conv_b']):
        w_oik = jnp.transpose(w, (2, 1, 0))                       # (F, E, fs)
        y = lax.conv_general_dilated(
            x_ncl, w_oik, window_strides=(1,), padding='VALID',
            dimension_numbers=('NCH', 'OIH', 'NCH'))              # (B, F, Lout)
        y = jnp.maximum(y + b[None, :, None], 0.0)
        pooled.append(jnp.max(y, axis=2))                         # (B, F)
    h = jnp.concatenate(pooled, axis=1)
    h = jnp.maximum(h @ params['fc1_w'] + params['fc1_b'][None], 0.0)
    h = (h - params['bn_mean']) / jnp.sqrt(params['bn_var'] + 1e-5)
    h = h * params['bn_gamma'] + params['bn_beta']
    return h @ params['fc2_w'] + params['fc2_b'][None]


if __name__ == "__main__":
    # Small shapes consistent with the module: batch=16, seq=16, embed=128,
    # filter_num=64, filter_sizes=(2,3,4,5), classes=10.  The tile heuristic
    # picks TB=8 -> grid=(2,) so both TensorCores / the pipeline get work.
    B, L = 16, 16
    num_classes = 10
    embed_size = 128
    filter_sizes = (2, 3, 4, 5)
    filter_num = 64

    key = jax.random.PRNGKey(0)
    k_params, k_tokens = jax.random.split(key)
    params = init_params(k_params, num_classes=num_classes, embed_size=embed_size,
                         filter_sizes=filter_sizes, filter_num=filter_num)
    token_ids = jax.random.randint(k_tokens, (B, L), 0, 65535, dtype=jnp.int32)

    prepped = prepare_params(params, seq_len=L)        # one-time host-side prep
    out = character_cnn_forward(token_ids, prepped)
    out = jax.block_until_ready(out)

    ref = jax.block_until_ready(reference_forward(token_ids, params))
    # bf16 MXU operands for the conv and fc stages (f32 accumulation) ->
    # bf16-level agreement with the pure-f32 reference.
    np.testing.assert_allclose(np.asarray(out), np.asarray(ref),
                               rtol=1e-2, atol=1e-2)

    print("KERNEL_OK")
</pallas_src>

<mosaic_0001>
module attributes {stable_mosaic.version = 11 : i64} {
  func.func @character_cnn_kernel(%arg0: i32, %arg1: memref<8x16x128xbf16, #tpu.memory_space<vmem>>, %arg2: memref<640x256xbf16, #tpu.memory_space<vmem>>, %arg3: memref<1x256xf32, #tpu.memory_space<vmem>>, %arg4: memref<16x256xf32, #tpu.memory_space<vmem>>, %arg5: memref<256x128xbf16, #tpu.memory_space<vmem>>, %arg6: memref<1x128xf32, #tpu.memory_space<vmem>>, %arg7: memref<128x128xbf16, #tpu.memory_space<vmem>>, %arg8: memref<1x128xf32, #tpu.memory_space<vmem>>, %arg9: memref<8x128xf32, #tpu.memory_space<vmem>>) attributes {dimension_semantics = [#tpu.dimension_semantics<parallel>], iteration_bounds = array<i64: 2>, scalar_prefetch = 0 : i64, scratch_operands = 0 : i64, tpu.core_type = #tpu.core_type<tc>, window_params = [{transform_indices = @transform_0, window_bounds = array<i64: 8, 16, 128>}, {pipeline_mode = #tpu.pipeline_mode<synchronous>, transform_indices = @transform_1, window_bounds = array<i64: 640, 256>}, {pipeline_mode = #tpu.pipeline_mode<synchronous>, transform_indices = @transform_2, window_bounds = array<i64: 1, 256>}, {pipeline_mode = #tpu.pipeline_mode<synchronous>, transform_indices = @transform_3, window_bounds = array<i64: 16, 256>}, {pipeline_mode = #tpu.pipeline_mode<synchronous>, transform_indices = @transform_4, window_bounds = array<i64: 256, 128>}, {pipeline_mode = #tpu.pipeline_mode<synchronous>, transform_indices = @transform_5, window_bounds = array<i64: 1, 128>}, {pipeline_mode = #tpu.pipeline_mode<synchronous>, transform_indices = @transform_6, window_bounds = array<i64: 128, 128>}, {pipeline_mode = #tpu.pipeline_mode<synchronous>, transform_indices = @transform_7, window_bounds = array<i64: 1, 128>}, {transform_indices = @transform_8, window_bounds = array<i64: 8, 128>}]} {
    %c0 = arith.constant 0 : index
    %c0_0 = arith.constant 0 : index
    %c0_1 = arith.constant 0 : index
    %0 = vector.load %arg1[%c0, %c0_0, %c0_1] : memref<8x16x128xbf16, #tpu.memory_space<vmem>>, vector<8x16x128xbf16>
    %1 = vector.shape_cast %0 : vector<8x16x128xbf16> to vector<128x128xbf16>
    %2 = arith.extf %1 : vector<128x128xbf16> to vector<128x128xf32>
    %c127_i32 = arith.constant 127 : i32
    %3 = tpu.dynamic_rotate %2 by %c127_i32 dim 0 : vector<128x128xf32>, i32 -> vector<128x128xf32>
    %4 = arith.truncf %3 : vector<128x128xf32> to vector<128x128xbf16>
    %c126_i32 = arith.constant 126 : i32
    %5 = tpu.dynamic_rotate %2 by %c126_i32 dim 0 : vector<128x128xf32>, i32 -> vector<128x128xf32>
    %6 = arith.truncf %5 : vector<128x128xf32> to vector<128x128xbf16>
    %c125_i32 = arith.constant 125 : i32
    %7 = tpu.dynamic_rotate %2 by %c125_i32 dim 0 : vector<128x128xf32>, i32 -> vector<128x128xf32>
    %8 = arith.truncf %7 : vector<128x128xf32> to vector<128x128xbf16>
    %c124_i32 = arith.constant 124 : i32
    %9 = tpu.dynamic_rotate %2 by %c124_i32 dim 0 : vector<128x128xf32>, i32 -> vector<128x128xf32>
    %10 = arith.truncf %9 : vector<128x128xf32> to vector<128x128xbf16>
    %11 = tpu.concatenate %1, %4, %6, %8, %10 in 1 : vector<128x128xbf16>, vector<128x128xbf16>, vector<128x128xbf16>, vector<128x128xbf16>, vector<128x128xbf16> -> vector<128x640xbf16>
    %c0_2 = arith.constant 0 : index
    %c0_3 = arith.constant 0 : index
    %12 = vector.load %arg2[%c0_2, %c0_3] : memref<640x256xbf16, #tpu.memory_space<vmem>>, vector<640x256xbf16>
    %cst = arith.constant dense<0.000000e+00> : vector<128x256xf32>
    %13 = tpu.matmul %11, %12, %cst {dimension_numbers = #tpu.dot_dimension_numbers<[1], [0], [0], [1], [0, 0, 1, 1], [], []>} : vector<128x640xbf16>, vector<640x256xbf16>, vector<128x256xf32> -> vector<128x256xf32>
    %14 = vector.shape_cast %13 : vector<128x256xf32> to vector<8x16x256xf32>
    %c0_4 = arith.constant 0 : index
    %c0_5 = arith.constant 0 : index
    %15 = vector.load %arg4[%c0_4, %c0_5] : memref<16x256xf32, #tpu.memory_space<vmem>>, vector<16x256xf32>
    %16 = vector.shape_cast %15 : vector<16x256xf32> to vector<1x16x256xf32>
    %cst_6 = arith.constant 0.000000e+00 : f32
    %17 = vector.broadcast %cst_6 : f32 to vector<1x16x256xf32>
    %18 = arith.cmpf ogt, %16, %17 : vector<1x16x256xf32>
    %cst_7 = arith.constant -1.000000e+30 : f32
    %19 = vector.shape_cast %18 : vector<1x16x256xi1> to vector<1x16x256xi1>
    %20 = vector.broadcast %19 : vector<1x16x256xi1> to vector<8x16x256xi1>
    %21 = vector.broadcast %cst_7 : f32 to vector<8x16x256xf32>
    %22 = arith.select %20, %14, %21 : vector<8x16x256xi1>, vector<8x16x256xf32>
    %cst_8 = arith.constant dense<0xFF800000> : vector<8x256xf32>
    %23 = vector.multi_reduction <maximumf>, %22, %cst_8 [1] : vector<8x16x256xf32> to vector<8x256xf32>
    %c0_9 = arith.constant 0 : index
    %c0_10 = arith.constant 0 : index
    %24 = vector.load %arg3[%c0_9, %c0_10] : memref<1x256xf32, #tpu.memory_space<vmem>>, vector<1x256xf32>
    %25 = vector.broadcast %24 : vector<1x256xf32> to vector<8x256xf32>
    %26 = arith.addf %23, %25 : vector<8x256xf32>
    %cst_11 = arith.constant 0.000000e+00 : f32
    %27 = vector.broadcast %cst_11 : f32 to vector<8x256xf32>
    %28 = arith.maximumf %26, %27 : vector<8x256xf32>
    %29 = arith.truncf %28 : vector<8x256xf32> to vector<8x256xbf16>
    %c0_12 = arith.constant 0 : index
    %c0_13 = arith.constant 0 : index
    %30 = vector.load %arg5[%c0_12, %c0_13] : memref<256x128xbf16, #tpu.memory_space<vmem>>, vector<256x128xbf16>
    %cst_14 = arith.constant dense<0.000000e+00> : vector<8x128xf32>
    %31 = tpu.matmul %29, %30, %cst_14 {dimension_numbers = #tpu.dot_dimension_numbers<[1], [0], [0], [1], [0, 0, 1, 1], [], []>} : vector<8x256xbf16>, vector<256x128xbf16>, vector<8x128xf32> -> vector<8x128xf32>
    %c0_15 = arith.constant 0 : index
    %c0_16 = arith.constant 0 : index
    %32 = vector.load %arg6[%c0_15, %c0_16] : memref<1x128xf32, #tpu.memory_space<vmem>>, vector<1x128xf32>
    %33 = vector.broadcast %32 : vector<1x128xf32> to vector<8x128xf32>
    %34 = arith.addf %31, %33 : vector<8x128xf32>
    %cst_17 = arith.constant 0.000000e+00 : f32
    %35 = vector.broadcast %cst_17 : f32 to vector<8x128xf32>
    %36 = arith.maximumf %34, %35 : vector<8x128xf32>
    %37 = arith.truncf %36 : vector<8x128xf32> to vector<8x128xbf16>
    %c0_18 = arith.constant 0 : index
    %c0_19 = arith.constant 0 : index
    %38 = vector.load %arg7[%c0_18, %c0_19] : memref<128x128xbf16, #tpu.memory_space<vmem>>, vector<128x128xbf16>
    %cst_20 = arith.constant dense<0.000000e+00> : vector<8x128xf32>
    %39 = tpu.matmul %37, %38, %cst_20 {dimension_numbers = #tpu.dot_dimension_numbers<[1], [0], [0], [1], [0, 0, 1, 1], [], []>} : vector<8x128xbf16>, vector<128x128xbf16>, vector<8x128xf32> -> vector<8x128xf32>
    %c0_21 = arith.constant 0 : index
    %c0_22 = arith.constant 0 : index
    %40 = vector.load %arg8[%c0_21, %c0_22] : memref<1x128xf32, #tpu.memory_space<vmem>>, vector<1x128xf32>
    %41 = vector.broadcast %40 : vector<1x128xf32> to vector<8x128xf32>
    %42 = arith.addf %39, %41 : vector<8x128xf32>
    %c0_23 = arith.constant 0 : index
    %c0_24 = arith.constant 0 : index
    %43 = vector.load %arg9[%c0_23, %c0_24] : memref<8x128xf32, #tpu.memory_space<vmem>>, vector<8x128xf32>
    tpu.vector_store %arg9[%c0_23, %c0_24], %42 {strides = array<i32>} : memref<8x128xf32, #tpu.memory_space<vmem>>, vector<8x128xf32>,
    return
  }
  func.func @transform_0(%arg0: i32) -> (i32, i32, i32) {
    %c0_i32 = arith.constant 0 : i32
    %c0_i32_0 = arith.constant 0 : i32
    %c0_i32_1 = arith.constant 0 : i32
    return %arg0, %c0_i32, %c0_i32_0 : i32, i32, i32
  }
  func.func @transform_1(%arg0: i32) -> (i32, i32) {
    %c0_i32 = arith.constant 0 : i32
    %c0_i32_0 = arith.constant 0 : i32
    %c0_i32_1 = arith.constant 0 : i32
    return %c0_i32, %c0_i32_0 : i32, i32
  }
  func.func @transform_2(%arg0: i32) -> (i32, i32) {
    %c0_i32 = arith.constant 0 : i32
    %c0_i32_0 = arith.constant 0 : i32
    %c0_i32_1 = arith.constant 0 : i32
    return %c0_i32, %c0_i32_0 : i32, i32
  }
  func.func @transform_3(%arg0: i32) -> (i32, i32) {
    %c0_i32 = arith.constant 0 : i32
    %c0_i32_0 = arith.constant 0 : i32
    %c0_i32_1 = arith.constant 0 : i32
    return %c0_i32, %c0_i32_0 : i32, i32
  }
  func.func @transform_4(%arg0: i32) -> (i32, i32) {
    %c0_i32 = arith.constant 0 : i32
    %c0_i32_0 = arith.constant 0 : i32
    %c0_i32_1 = arith.constant 0 : i32
    return %c0_i32, %c0_i32_0 : i32, i32
  }
  func.func @transform_5(%arg0: i32) -> (i32, i32) {
    %c0_i32 = arith.constant 0 : i32
    %c0_i32_0 = arith.constant 0 : i32
    %c0_i32_1 = arith.constant 0 : i32
    return %c0_i32, %c0_i32_0 : i32, i32
  }
  func.func @transform_6(%arg0: i32) -> (i32, i32) {
    %c0_i32 = arith.constant 0 : i32
    %c0_i32_0 = arith.constant 0 : i32
    %c0_i32_1 = arith.constant 0 : i32
    return %c0_i32, %c0_i32_0 : i32, i32
  }
  func.func @transform_7(%arg0: i32) -> (i32, i32) {
    %c0_i32 = arith.constant 0 : i32
    %c0_i32_0 = arith.constant 0 : i32
    %c0_i32_1 = arith.constant 0 : i32
    return %c0_i32, %c0_i32_0 : i32, i32
  }
  func.func @transform_8(%arg0: i32) -> (i32, i32) {
    %c0_i32 = arith.constant 0 : i32
    %c0_i32_0 = arith.constant 0 : i32
    return %arg0, %c0_i32 : i32, i32
  }
}

</mosaic_0001>

<bundles_post_ra>
// kernel: tpu_custom_call.1
= control target key start
LH: loop header
LB: loop body
LE: loop exit
PB: predicated region body
PF: predicated region fallthrough
CT: control target
= control target key end

     0   :  { %s3926_s0 = inlined_call_operand.hbm [shape: bf16[16,16,128], index: 0, kind: input, shape index: {}]   ;;  %s3927_s1 = inlined_call_operand.hbm [shape: bf16[640,256], index: 1, kind: input, shape index: {}]   ;;  %s3928_s2 = inlined_call_operand.vmem [shape: f32[1,256], index: 2, kind: input, shape index: {}]   ;;  %s3929_s3 = inlined_call_operand.hbm [shape: f32[16,256], index: 3, kind: input, shape index: {}]   ;;  %s3930_s4 = inlined_call_operand.hbm [shape: bf16[256,128], index: 4, kind: input, shape index: {}]   ;;  %s3931_s5 = inlined_call_operand.vmem [shape: f32[1,128], index: 5, kind: input, shape index: {}]   ;;  %s3932_s6 = inlined_call_operand.hbm [shape: bf16[128,128], index: 6, kind: input, shape index: {}]   ;;  %s3933_s7 = inlined_call_operand.vmem [shape: f32[1,128], index: 7, kind: input, shape index: {}]   ;;  %s3934_s8 = inlined_call_operand.hbm [shape: f32[16,128], index: 8, kind: output, shape index: {}]  }
   0x1   :  { %3944 = sst [smem:[#allocation26_spill]] %s3927_s1 }
   0x2   :  { %3945 = sst [smem:[#allocation27_spill]] %s3929_s3 }
   0x3   :  { %13 = vsyncpa [#allocation3], 0 }
   0x4   :  { %15 = vsyncpa [#allocation3 + $0x1], 0 }
   0x5   :  { %16 = vsyncpa [#allocation6], 0 }
   0x6   :  { %17 = vsyncpa [#allocation9], 0 }
   0x7   :  { %18 = vsyncpa [#allocation4], 0 }
   0x8   :  { %20 = vsyncpa [#allocation4 + $0x1], 0  ;;  %s2863_s27 = smov 0   ;;  %s2865_s28 = smov 0  }
   0x9   :  { %s2867_s29 = smov 0   ;;  %s2869_s30 = smov 0  }
   0xa LB: > { %s2884_s9 = sadd.s32 4294967295, %s2801_s30   ;;  %s2152_s10 = sadd.s32 4294967294, %s2801_s30   ;;  %s2801_s30 = sphi %s2869_s30, %s3998_s30   ;;  %s2797_s29 = sphi %s2867_s29, %s3997_s29   ;;  %s2793_s28 = sphi %s2865_s28, %s3996_s28   ;;  %s2789_s27 = sphi %s2863_s27, %s3995_s27  }
   0xb   : > { %p46_p0 = scmp.ne.s32.totalorder %s2793_s28, %s2789_s27  ;;  %p3935_p1 = scmp.eq.s32.totalorder %s2884_s9, 0 }
   0xc   : > { %p223_p3 = scmp.eq.s32.totalorder %s2152_s10, 1  ;;  %p2153_p5 = scmp.ge.s32.totalorder %s2801_s30, 1 }
   0xd   : > { %p2893_p4 = por %p3935_p1, %p46_p0  ;;  %p230_p7 = scmp.lt.s32.totalorder %s2801_s30, 3 }
   0xe   : > { %p2898_p6 = por %p223_p3, %p46_p0  ;;  %s2803_s14 = smov [#allocation5]  }
   0xf   : > { %s3946_s11 = scalar_select %p2893_p4, 1, 0 }
  0x10   : > { %s3947_s12 = scalar_select %p2898_p6, 1, 0 }
  0x11   : > { %p2903_p8 = pnand %p2153_p5, %p230_p7  ;;  %s242_s15 = sshll.u32 %s2803_s14, 4  ;;  %s243_s15 = int_to_ptr.vmem [resolvable:$true] %s242_s15 }
  0x12   : > { %s2804_s17 = smov [#allocation8]   ;;  %s2608_s19 = scalar_lea.vmem %s243_s15, 10240 }
  0x13   : > { %s3948_s13 = scalar_select %p2903_p8, 1, 0 }
  0x14   : > { %p2361_p9 = pneg %p2903_p8  ;;  %s271_s18 = sshll.u32 %s2804_s17, 4  ;;  %s272_s18 = int_to_ptr.vmem [resolvable:$true] %s271_s18 }
  0x15   : > { %p2609_p13 = scmp.ne.s32.totalorder %s243_s15, %s2608_s19  ;;  %p2616_p5 = scmp.lt.s32.totalorder %s243_s15, %s243_s15 }
  0x16   : > { %p2912_p11 = pnand %p2361_p9, %p3935_p1  ;;  %p2617_p7 = scmp.lt.s32.totalorder %s2608_s19, %s2608_s19 }
  0x18   : > { %p2599_p12 = pneg %p2912_p11  ;;  %p2618_p10 = por %p2617_p7, %p2616_p5 }
  0x1a   : > { %p2611_p0 = pnand %p2609_p13, %p2599_p12 }
  0x1c   : > { %p2612_p3 = pneg %p2611_p0 }
  0x1e   : > { %p2619_p9 = pnand %p2618_p10, %p2612_p3 }
  0x20   : > { %2622 = shalt.err (!%p2619_p9)
}
  0x21   : > { %s2805_s20 = smov 128   ;;  %s2806_s21 = smov 8  }
  0x22   : > { %s3950_s1 = sld [smem:[#allocation26_spill]]  ;;  %s2634_s24 = scalar_lea.vmem %s272_s18, 2048 }
  0x23   : > { %p2635_p1 = scmp.ne.s32.totalorder %s272_s18, %s2634_s24  ;;  %p2642_p2 = scmp.lt.s32.totalorder %s272_s18, %s272_s18 }
  0x24   : > { %p2643_p6 = scmp.lt.s32.totalorder %s2634_s24, %s2634_s24 }
  0x25   : > { %p2637_p13 = pnand %p2635_p1, %p2599_p12 }
  0x26   : > { %p2644_p5 = por %p2643_p6, %p2642_p2 }
  0x27   : > { %p2638_p0 = pneg %p2637_p13 }
  0x28   : > { %2364 = dma.hbm_to_vmem [thread:$0]  (!%p2912_p11), %s3950_s1, 10240, %s243_s15, [#allocation6], %s2805_s20, %s2805_s20, %s2806_s21  }
  0x29   : > { %p2645_p10 = pnand %p2644_p5, %p2638_p0 }
  0x2b   : > { %2648 = shalt.err (!%p2645_p10)
}
  0x2c   : > { %s3936_s25 = smov 64   ;;  %s3937_s26 = smov 4  }
  0x2d   : > { %2370 = dma.hbm_to_vmem [thread:$0]  (!%p2912_p11), %s3930_s4, 2048, %s272_s18, [#allocation9], %s3936_s25, %s3936_s25, %s3937_s26  }
  0x2e   : > { %s2809_s15 = smov [#allocation7]  }
  0x2f   : > { %s258_s17 = sshll.u32 %s2809_s15, 4  ;;  %s259_s17 = int_to_ptr.vmem [resolvable:$true] %s258_s17 }
  0x30   : > { %s2660_s19 = scalar_lea.vmem %s259_s17, 512  ;;  %p2668_p3 = scmp.lt.s32.totalorder %s259_s17, %s259_s17 }
  0x31   : > { %p2661_p1 = scmp.ne.s32.totalorder %s259_s17, %s2660_s19  ;;  %p2669_p7 = scmp.lt.s32.totalorder %s2660_s19, %s2660_s19 }
  0x33   : > { %p2663_p2 = pnand %p2661_p1, %p2599_p12  ;;  %p2670_p9 = por %p2669_p7, %p2668_p3 }
  0x35   : > { %p2664_p6 = pneg %p2663_p2 }
  0x37   : > { %p2671_p13 = pnand %p2670_p9, %p2664_p6 }
  0x39   : > { %2674 = shalt.err (!%p2671_p13)
}
  0x3a   : > { %s2810_s20 = smov 256   ;;  %s2811_s21 = smov 16  }
  0x3b   : > { %s3951_s3 = sld [smem:[#allocation27_spill]]  ;;  %s2812_s23 = smov [#allocation10]  }
  0x3c   : > { %s287_s24 = sshll.u32 %s2812_s23, 4  ;;  %s288_s24 = int_to_ptr.vmem [resolvable:$true] %s287_s24 }
  0x3d   : > { %s2686_s10 = scalar_lea.vmem %s288_s24, 1024  ;;  %p2694_p1 = scmp.lt.s32.totalorder %s288_s24, %s288_s24 }
  0x3e   : > { %p2687_p0 = scmp.ne.s32.totalorder %s288_s24, %s2686_s10  ;;  %p2695_p2 = scmp.lt.s32.totalorder %s2686_s10, %s2686_s10 }
  0x40   : > { %p2689_p5 = pnand %p2687_p0, %p2599_p12  ;;  %p2696_p6 = por %p2695_p2, %p2694_p1 }
  0x41   : > { %2367 = dma.hbm_to_vmem [thread:$0]  (!%p2912_p11), %s3951_s3, 512, %s259_s17, [#allocation6], %s2810_s20, %s2810_s20, %s2811_s21  }
  0x42   : > { %p2690_p10 = pneg %p2689_p5 }
  0x44   : > { %p2697_p3 = pnand %p2696_p6, %p2690_p10 }
  0x46   : > { %2700 = shalt.err (!%p2697_p3)
}
  0x47   : > { %2373 = dma.hbm_to_vmem [thread:$0]  (!%p2912_p11), %s3932_s6, 1024, %s288_s24, [#allocation9], %s3936_s25, %s3936_s25, %s3937_s26  }
  0x48   : > { %s2957_s17 = sadd.s32 1, %s2801_s30   ;;  %s33_s16 = sadd.s32 1, %s2797_s29 }
  0x49   : > { %s30_s19 = ssub.s32 %s2801_s30, %s2957_s17  ;;  %p40_p12 = scmp.ne.s32.totalorder %s2797_s29, %s2793_s28 }
  0x4a   : > { %p31_p7 = scmp.eq.s32.totalorder %s30_s19, 0  ;;  %p41_p9 = scmp.eq.s32.totalorder %s2801_s30, 0 }
  0x4b   : > { %p3952_p13 = scmp.eq.s32.totalorder %s2884_s9, 1  ;;  %p2386_p5 = scmp.lt.s32.totalorder %s2801_s30, 2 }
  0x4c   : > { %s2973_s21 = scalar_select %p31_p7, %s2797_s29, %s33_s16  }
  0x4d   : > { %p2967_p0 = por %p3952_p13, %p40_p12  ;;  %p42_p10 = por %p41_p9, %p40_p12 }
  0x4e   : > { %s304_s18 = sand.u32 1, %s2797_s29   ;;  %s2289_s23 = sshll.u32 %s2801_s30, 10 }
  0x4f   : > { %s3953_s20 = scalar_select %p2967_p0, 1, 0 }
  0x50   : > { %s2159_s22 = sshll.u32 %s304_s18, 6  ;;  %s2980_s14 = scalar_lea.hbm %s3926_s0, %s2289_s23 }
  0x51   : > { %s308_s15 = scalar_lea.vmem [#allocation2], %s2159_s22  ;;  %p2984_p11 = pnand %p2386_p5, %p42_p10 }
  0x52   : > { %s316_s19 = sshll.u32 %s308_s15, 4  ;;  %s2988_s16 = scalar_lea.sflag [#allocation3], %s304_s18  ;;  %s2982_s19 = int_to_ptr.vmem [resolvable:$true] %s316_s19 }
  0x53   : > { %s2701_s26 = scalar_lea.hbm %s2980_s14, 1024  ;;  %p2703_p2 = pneg %p2984_p11 }
  0x54   : > { %p2702_p1 = scmp.ne.s32.totalorder %s2980_s14, %s2701_s26  ;;  %s2706_s22 = scalar_lea.hbm %s3926_s0, 2048 }
  0x55   : > { %p2707_p12 = scmp.lt.s32.totalorder %s2980_s14, %s3926_s0  ;;  %p2708_p7 = scmp.lt.s32.totalorder %s2706_s22, %s2701_s26 }
  0x56   : > { %p2704_p6 = pnand %p2703_p2, %p2702_p1 }
  0x57   : > { %p2709_p9 = por %p2708_p7, %p2707_p12 }
  0x58   : > { %p2705_p3 = pneg %p2704_p6 }
  0x5a   : > { %p2710_p13 = pnand %p2709_p9, %p2705_p3 }
  0x5c   : > { %2713 = shalt.err (!%p2710_p13)
}
  0x5d   : > { %s2714_s18 = scalar_lea.vmem %s2982_s19, 1024  ;;  %s2813_s1 = smov [#allocation2]  }
  0x5e   : > { %p2715_p5 = scmp.ne.s32.totalorder %s2982_s19, %s2714_s18  ;;  %s2719_s3 = sshll.u32 %s2813_s1, 4  ;;  %s2720_s3 = int_to_ptr.vmem [resolvable:$false] %s2719_s3 }
  0x5f   : > { %s2721_s23 = scalar_lea.vmem %s2720_s3, 2048  ;;  %p2722_p6 = scmp.lt.s32.totalorder %s2982_s19, %s2720_s3 }
  0x60   : > { %p2717_p10 = pnand %p2715_p5, %p2703_p2  ;;  %p2723_p0 = scmp.lt.s32.totalorder %s2721_s23, %s2714_s18 }
  0x62   : > { %p2718_p1 = pneg %p2717_p10  ;;  %p2724_p4 = por %p2723_p0, %p2722_p6 }
  0x64   : > { %p2725_p8 = pnand %p2724_p4, %p2718_p1 }
  0x66   : > { %2728 = shalt.err (!%p2725_p8)
}
  0x67   : > { %s3955_s26 = smov 4   ;;  %s3956_s24 = smov 64  }
  0x68   : > { %2377 = dma.hbm_to_vmem [thread:$0]  (!%p2984_p11), %s2980_s14, 1024, %s2982_s19, %s2988_s16, %s3956_s24, %s3956_s24, %s3955_s26  }
  0x69   : > { %p3957_p2 = scmp.ne.s32.totalorder %s3948_s13, 0 }
  0x6b   : > { %328 = sbr.rel (%p3957_p2) target bundleno = 951 (0x3b7), region = 52 }
  0x70   : > { %s3015_s1 = sand.u32 1, %s2793_s28   ;;  %p3958_p4 = scmp.ne.s32.totalorder %s3946_s11, 0 }
  0x71   : > { %s2164_s3 = sshll.u32 %s3015_s1, 6  ;;  %s331_s22 = scalar_lea.sflag [#allocation3], %s3015_s1 }
  0x72   : > { %s3019_s10 = scalar_lea.vmem [#allocation2], %s2164_s3 }
  0x73   : > { %2772 = dma.done.wait (%p3958_p4), %s331_s22, 1024  }
  0x74   : > { %2774 = vsyncadd (%p3958_p4), %s331_s22, 4294966272  ;;  %p3959_p8 = scmp.eq.s32.totalorder %s2884_s9, 0 }
  0x76   : > { %2776 = dma.done.wait (%p3959_p8), [#allocation6], 10752   ;;  %p3960_p0 = pmov %p3959_p8 }
  0x78   : > { %2778 = vsyncadd (%p3960_p0), [#allocation6], 4294956544  ;;  %p3961_p11 = pmov %p3960_p0 }
  0x79   : > { %p3962_p3 = pmov %p3960_p0 }
  0x7a   : > { %2780 = dma.done.wait (%p3961_p11), [#allocation9], 3072  }
  0x7b   : > { %2782 = vsyncadd (%p3962_p3), [#allocation9], 4294964224  ;;  %v2437_v0 = vld [vmem:[#allocation5 + $0x74] ss:$8 sps:$4 sm:$0xff]   ;;  %v2441_v2 = vld [vmem:[#allocation5 + $0x70] ss:$8 sps:$4 sm:$0xff]   ;;  %v433_v39 = vlaneseq }
  0x7c   : > { %v2439_v1 = vld [vmem:[#allocation5 + $0x174] ss:$8 sps:$4 sm:$0xff]   ;;  %1111 = vmatprep.subr.bf16.mxu0 %v2437_v0  ;;  %v2442_v3 = vld [vmem:[#allocation5 + $0x170] ss:$8 sps:$4 sm:$0xff]   ;;  %v2443_v4 = vld [vmem:[#allocation5 + $0x64] ss:$8 sps:$4 sm:$0xff]  }
  0x7d   : > { %1224 = vmatprep.subr.bf16.mxu1 %v2439_v1  ;;  %1112 = vmatpush1.bf16.msra.mxu0 %v2441_v2  ;;  %v2445_v5 = vld [vmem:[#allocation5 + $0x164] ss:$8 sps:$4 sm:$0xff]   ;;  %v2447_v6 = vld [vmem:[#allocation5 + $0x60] ss:$8 sps:$4 sm:$0xff]   ;;  %v2449_v8 = vld [vmem:[#allocation5 + $0x54] ss:$8 sps:$4 sm:$0xff]  }
  0x7e   : > { %1225 = vmatpush1.bf16.msra.mxu1 %v2442_v3  ;;  %1113 = vmatprep.subr.bf16.mxu0 %v2443_v4  ;;  %v2448_v7 = vld [vmem:[#allocation5 + $0x160] ss:$8 sps:$4 sm:$0xff]   ;;  %v2451_v9 = vld [vmem:[#allocation5 + $0x154] ss:$8 sps:$4 sm:$0xff]   ;;  %v2453_v10 = vld [vmem:[#allocation5 + $0x50] ss:$8 sps:$4 sm:$0xff]  }
  0x7f   : > { %1226 = vmatprep.subr.bf16.mxu1 %v2445_v5  ;;  %v2454_v11 = vld [vmem:[#allocation5 + $0x150] ss:$8 sps:$4 sm:$0xff]   ;;  %v2455_v12 = vld [vmem:[#allocation5 + $0x44] ss:$8 sps:$4 sm:$0xff]   ;;  %v2459_v14 = vld [vmem:[#allocation5 + $0x40] ss:$8 sps:$4 sm:$0xff]  }
  0x80   : > { %v2457_v13 = vld [vmem:[#allocation5 + $0x144] ss:$8 sps:$4 sm:$0xff]   ;;  %v2460_v15 = vld [vmem:[#allocation5 + $0x140] ss:$8 sps:$4 sm:$0xff]   ;;  %v2461_v16 = vld [vmem:[#allocation5 + $0x34] ss:$8 sps:$4 sm:$0xff]  }
  0x81   : > { %1114 = vmatpush1.bf16.msra.mxu0 %v2447_v6  ;;  %v2463_v17 = vld [vmem:[#allocation5 + $0x134] ss:$8 sps:$4 sm:$0xff]   ;;  %v2465_v18 = vld [vmem:[#allocation5 + $0x30] ss:$8 sps:$4 sm:$0xff]   ;;  %v2467_v20 = vld [vmem:[#allocation5 + $0x24] ss:$8 sps:$4 sm:$0xff]  }
  0x82   : > { %1227 = vmatpush1.bf16.msra.mxu1 %v2448_v7  ;;  %1115 = vmatprep.subr.bf16.mxu0 %v2449_v8  ;;  %v2466_v19 = vld [vmem:[#allocation5 + $0x130] ss:$8 sps:$4 sm:$0xff]   ;;  %v2469_v21 = vld [vmem:[#allocation5 + $0x124] ss:$8 sps:$4 sm:$0xff]   ;;  %v2471_v22 = vld [vmem:[#allocation5 + $0x20] ss:$8 sps:$4 sm:$0xff]  }
  0x83   : > { %1228 = vmatprep.subr.bf16.mxu1 %v2451_v9  ;;  %v2472_v23 = vld [vmem:[#allocation5 + $0x120] ss:$8 sps:$4 sm:$0xff]   ;;  %v2473_v24 = vld [vmem:[#allocation5 + $0x14] ss:$8 sps:$4 sm:$0xff]   ;;  %v2477_v26 = vld [vmem:[#allocation5 + $0x10] ss:$8 sps:$4 sm:$0xff]  }
  0x84   : > { %v2475_v25 = vld [vmem:[#allocation5 + $0x114] ss:$8 sps:$4 sm:$0xff]   ;;  %v2478_v27 = vld [vmem:[#allocation5 + $0x110] ss:$8 sps:$4 sm:$0xff]   ;;  %v2479_v28 = vld [vmem:[#allocation5 + $0x4] ss:$8 sps:$4 sm:$0xff]  }
  0x85   : > { %1116 = vmatpush1.bf16.msra.mxu0 %v2453_v10  ;;  %v2481_v29 = vld [vmem:[#allocation5 + $0x104] ss:$8 sps:$4 sm:$0xff]   ;;  %v2483_v30 = vld [vmem:[#allocation5] ss:$8 sps:$4 sm:$0xff]   ;;  %v2485_v32 = vld [vmem:[#allocation5 + $0xf4] ss:$8 sps:$4 sm:$0xff]  }
  0x86   : > { %1229 = vmatpush1.bf16.msra.mxu1 %v2454_v11  ;;  %1117 = vmatprep.subr.bf16.mxu0 %v2455_v12  ;;  %v2484_v31 = vld [vmem:[#allocation5 + $0x100] ss:$8 sps:$4 sm:$0xff]   ;;  %v2487_v33 = vld [vmem:[#allocation5 + $0x1f4] ss:$8 sps:$4 sm:$0xff]   ;;  %v2489_v34 = vld [vmem:[#allocation5 + $0xf0] ss:$8 sps:$4 sm:$0xff]  }
  0x87   : > { %1230 = vmatprep.subr.bf16.mxu1 %v2457_v13  ;;  %v2490_v35 = vld [vmem:[#allocation5 + $0x1f0] ss:$8 sps:$4 sm:$0xff]   ;;  %v2491_v36 = vld [vmem:[#allocation5 + $0xe4] ss:$8 sps:$4 sm:$0xff]   ;;  %v2495_v38 = vld [vmem:[#allocation5 + $0xe0] ss:$8 sps:$4 sm:$0xff]  }
  0x88   : > { %v2493_v37 = vld [vmem:[#allocation5 + $0x1e4] ss:$8 sps:$4 sm:$0xff]   ;;  %v2496_v40 = vld [vmem:[#allocation5 + $0x1e0] ss:$8 sps:$4 sm:$0xff]   ;;  %v2497_v41 = vld [vmem:[#allocation5 + $0xd4] ss:$8 sps:$4 sm:$0xff]  }
  0x89   : > { %1118 = vmatpush1.bf16.msra.mxu0 %v2459_v14  ;;  %v2499_v42 = vld [vmem:[#allocation5 + $0x1d4] ss:$8 sps:$4 sm:$0xff]   ;;  %v2501_v43 = vld [vmem:[#allocation5 + $0xd0] ss:$8 sps:$4 sm:$0xff]   ;;  %v3033_v45 = vshrl.u32 %v433_v39, 7  ;;  %v3036_v49 = vld [vmem:[%s3019_s10] sm:$0xff]  }
  0x8a   : > { %1231 = vmatpush1.bf16.msra.mxu1 %v2460_v15  ;;  %1119 = vmatprep.subr.bf16.mxu0 %v2461_v16  ;;  %v2502_v44 = vld [vmem:[#allocation5 + $0x1d0] ss:$8 sps:$4 sm:$0xff]   ;;  %v2503_v46 = vld [vmem:[#allocation5 + $0xc4] ss:$8 sps:$4 sm:$0xff]   ;;  %v2507_v48 = vld [vmem:[#allocation5 + $0xc0] ss:$8 sps:$4 sm:$0xff]   ;;  %v3042_v51 = vunpack.c.l.bf16 %v3036_v49  ;;  %v3045_v52 = vunpack.c.h.bf16 %v3036_v49 }
  0x8b   : > { %1232 = vmatprep.subr.bf16.mxu1 %v2463_v17  ;;  %v2505_v47 = vld [vmem:[#allocation5 + $0x1c4] ss:$8 sps:$4 sm:$0xff]   ;;  %vm435_vm0 = vcmp.lt.s32.totalorder %v3033_v45, 7  ;;  %vm517_vm1 = vcmp.lt.s32.totalorder %v3033_v45, 5  ;;  %v2508_v53 = vld [vmem:[#allocation5 + $0x1c0] ss:$8 sps:$4 sm:$0xff]  }
  0x8c   : > { %v3039_v50 = vld [vmem:[%s3019_s10 + $0x8] sm:$0xff]   ;;  %v2509_v54 = vld [vmem:[#allocation5 + $0xb4] ss:$8 sps:$4 sm:$0xff]   ;;  %v417_v57 = vrot.slane %v3042_v51, 1  ;;  %v418_v58 = vrot.slane %v3045_v52, 1  ;;  %v501_v59 = vrot.slane %v3042_v51, 3 }
  0x8d   : > { %1120 = vmatpush1.bf16.msra.mxu0 %v2465_v18  ;;  %v2511_v55 = vld [vmem:[#allocation5 + $0x1b4] ss:$8 sps:$4 sm:$0xff]   ;;  %v3050_v56 = vunpack.c.l.bf16 %v3039_v50  ;;  %v502_v60 = vrot.slane %v3045_v52, 3  ;;  %v2513_v63 = vld [vmem:[#allocation5 + $0xb0] ss:$8 sps:$4 sm:$0xff]   ;;  %v3081_v15 = vunpack.c.h.bf16 %v3039_v50  ;;  %vm476_vm2 = vcmp.lt.s32.totalorder %v3033_v45, 6 }
  0x8e   : > { %1233 = vmatpush1.bf16.msra.mxu1 %v2466_v19  ;;  %1121 = vmatprep.subr.bf16.mxu0 %v2467_v20  ;;  %v450_v0 = vsel %vm435_vm0, %v417_v57, %v418_v58  ;;  %v2514_v2 = vld [vmem:[#allocation5 + $0x1b0] ss:$8 sps:$4 sm:$0xff]   ;;  %v2515_v3 = vld [vmem:[#allocation5 + $0xa4] ss:$8 sps:$4 sm:$0xff]   ;;  %v2519_v10 = vld [vmem:[#allocation5 + $0xa0] ss:$8 sps:$4 sm:$0xff]  }
  0x8f   : > { %1234 = vmatprep.subr.bf16.mxu1 %v2469_v21  ;;  %v419_v61 = vrot.slane %v3050_v56, 1  ;;  %v503_v62 = vrot.slane %v3050_v56, 3  ;;  %v532_v1 = vsel %vm517_vm1, %v501_v59, %v502_v60  ;;  %v2517_v6 = vld [vmem:[#allocation5 + $0x1a4] ss:$8 sps:$4 sm:$0xff]   ;;  %v3075_v9 = vld [vmem:[%s3019_s10 + $0x10] sm:$0xff]   ;;  %v3078_v13 = vld [vmem:[%s3019_s10 + $0x18] sm:$0xff]  }
  0x90   : > { %v2520_v11 = vld [vmem:[#allocation5 + $0x1a0] ss:$8 sps:$4 sm:$0xff]   ;;  %v2521_v12 = vld [vmem:[#allocation5 + $0x94] ss:$8 sps:$4 sm:$0xff]   ;;  %v3084_v16 = vunpack.c.l.bf16 %v3075_v9  ;;  %v2525_v17 = vld [vmem:[#allocation5 + $0x90] ss:$8 sps:$4 sm:$0xff]  }
  0x91   : > { %1122 = vmatpush1.bf16.msra.mxu0 %v2471_v22  ;;  %v449_v4 = vsel %vm435_vm0, %v418_v58, %v419_v61  ;;  %v531_v5 = vsel %vm517_vm1, %v502_v60, %v503_v62  ;;  %v2523_v14 = vld [vmem:[#allocation5 + $0x194] ss:$8 sps:$4 sm:$0xff]   ;;  %v2526_v18 = vld [vmem:[#allocation5 + $0x190] ss:$8 sps:$4 sm:$0xff]   ;;  %v3941_v19 = vrot.slane %v3042_v51, 2  ;;  %v461_v20 = vrot.slane %v3045_v52, 2 }
  0x92   : > { %1235 = vmatpush1.bf16.msra.mxu1 %v2472_v23  ;;  %1123 = vmatprep.subr.bf16.mxu0 %v2473_v24  ;;  %v452_v7 = vpack.c.bf16 %v449_v4, %v450_v0  ;;  %v534_v8 = vpack.c.bf16 %v531_v5, %v532_v1  ;;  %v462_v21 = vrot.slane %v3050_v56, 2  ;;  %v2527_v22 = vld [vmem:[#allocation5 + $0x84] ss:$8 sps:$4 sm:$0xff]   ;;  %v3091_v24 = vunpack.c.h.bf16 %v3075_v9  ;;  %s2169_s19 = sshll.u32 %s3015_s1, 3  ;;  %s2285_s18 = sshll.u32 %s2884_s9, 7 }
  0x93   : > { %1236 = vmatprep.subr.bf16.mxu1 %v2475_v25  ;;  %v2529_v23 = vld [vmem:[#allocation5 + $0x184] ss:$8 sps:$4 sm:$0xff]   ;;  %v3094_v25 = vunpack.c.l.bf16 %v3078_v13  ;;  %vm558_vm3 = vcmp.lt.s32.totalorder %v3033_v45, 4  ;;  %vm1742_vm8 = vcmask 1041409   ;;  %vm1745_vm9 = vcmask 1042434   ;;  %s382_s23 = scalar_lea.vmem [#allocation11], %s2169_s19  ;;  %s3883_s22 = scalar_lea.hbm %s3934_s8, %s2285_s18 }
  0x94   : > { %1143 = vmatprep.mubr.bf16.mxu0 %v452_v7  ;;  %1256 = vmatprep.mubr.bf16.mxu1 %v534_v8  ;;  %v465_v58 = vrot.slane %v3091_v24, 2  ;;  %vm1748_vm10 = vcmask 1043459   ;;  %vm1751_vm11 = vcmask 1044484   ;;  %vm1754_vm12 = vcmask 1045509   ;;  %s2044_s26 = sshll.u32 %s382_s23, 4  ;;  %p3992_p7 = scmp.ne.s32.totalorder %s3953_s20, 0  ;;  %s3885_s26 = int_to_ptr.vmem [resolvable:$true] %s2044_s26 }
  0x95   : > { %1124 = vmatpush1.bf16.msra.mxu0 %v2477_v26  ;;  %v3097_v26 = vld [vmem:[%s3019_s10 + $0x20] sm:$0xff]   ;;  %v423_v39 = vrot.slane %v3094_v25, 1  ;;  %v466_v60 = vrot.slane %v3094_v25, 2  ;;  %vm1757_vm13 = vcmask 1046534   ;;  %vm1760_vm14 = vcmask 1047559   ;;  %s2729_s11 = scalar_lea.vmem %s3885_s26, 128 }
  0x96   : > { %1237 = vmatpush1.bf16.msra.mxu1 %v2478_v27  ;;  %1125 = vmatprep.subr.bf16.mxu0 %v2479_v28  ;;  %v420_v27 = vrot.slane %v3081_v15, 1  ;;  %v421_v28 = vrot.slane %v3084_v16, 1  ;;  %vm2816_vm15 = vmmov 0   ;;  %p2730_p12 = scmp.ne.s32.totalorder %s3885_s26, %s2729_s11  ;;  %s2817_s9 = smov [#allocation11]  }
  0x97   : > { %1238 = vmatprep.subr.bf16.mxu1 %v2481_v29  ;;  %v504_v29 = vrot.slane %v3081_v15, 3  ;;  %s2733_s13 = sshll.u32 %s2817_s9, 4  ;;  %s2734_s13 = int_to_ptr.vmem [resolvable:$false] %s2733_s13 }
  0x98   : > { %p2731_p9 = pnand %p2730_p12, %p3992_p7  ;;  %s2735_s25 = scalar_lea.vmem %s2734_s13, 256 }
  0x99   : > { %1126 = vmatpush1.bf16.msra.mxu0 %v2483_v30  ;;  %v505_v30 = vrot.slane %v3084_v16, 3  ;;  %p2736_p5 = scmp.lt.s32.totalorder %s3885_s26, %s2734_s13  ;;  %p2737_p10 = scmp.lt.s32.totalorder %s2735_s25, %s2729_s11 }
  0x9a   : > { %1239 = vmatpush1.bf16.msra.mxu1 %v2484_v31  ;;  %1127 = vmatprep.subr.bf16.mxu0 %v2485_v32  ;;  %v2531_v31 = vld [vmem:[#allocation5 + $0x80] ss:$8 sps:$4 sm:$0xff]   ;;  %p2732_p13 = pneg %p2731_p9 }
  0x9b   : > { %1240 = vmatprep.subr.bf16.mxu1 %v2487_v33  ;;  %v2532_v32 = vld [vmem:[#allocation5 + $0x180] ss:$8 sps:$4 sm:$0xff]   ;;  %v490_v33 = vsel %vm476_vm2, %v461_v20, %v462_v21  ;;  %p2738_p1 = por %p2737_p10, %p2736_p5 }
  0x9d   : > { %1128 = vmatpush2.bf16.msra.mxu0 %v2489_v34  ;;  %v491_v34 = vsel %vm476_vm2, %v3941_v19, %v461_v20  ;;  %v3166_v20 = vsel %vm476_vm2, %v465_v58, %v466_v60  ;;  %p2739_p6 = pnand %p2738_p1, %p2732_p13 }
  0x9e   : > { %1241 = vmatpush2.bf16.msra.mxu1 %v2490_v35  ;;  %1129 = vmatprep.subr.bf16.mxu0 %v2491_v36  ;;  %v463_v35 = vrot.slane %v3081_v15, 2  ;;  %v464_v36 = vrot.slane %v3084_v16, 2 }
  0x9f   : > { %1242 = vmatprep.subr.bf16.mxu1 %v2493_v37  ;;  %v2536_v37 = vld [vmem:[#allocation5 + $0x274] ss:$8 sps:$4 sm:$0xff]  }
  0xa0   : > { %v489_v7 = vsel %vm476_vm2, %v462_v21, %v463_v35  ;;  %v2544_v21 = vld [vmem:[#allocation5 + $0x254] ss:$8 sps:$4 sm:$0xff]  }
  0xa1   : > { %1130 = vmatpush2.bf16.msra.mxu0 %v2495_v38  ;;  %v422_v38 = vrot.slane %v3091_v24, 1 }
  0xa2   : > { %1243 = vmatpush2.bf16.msra.mxu1 %v2496_v40  ;;  %1131 = vmatprep.subr.bf16.mxu0 %v2497_v41  ;;  %v3114_v40 = vunpack.c.h.bf16 %v3078_v13  ;;  %v3117_v41 = vunpack.c.l.bf16 %v3097_v26 }
  0xa3   : > { %1244 = vmatprep.subr.bf16.mxu1 %v2499_v42  ;;  %v506_v42 = vrot.slane %v3091_v24, 3  ;;  %v446_v8 = vsel %vm435_vm0, %v421_v28, %v422_v38 }
  0xa4   : > { %v424_v0 = vrot.slane %v3114_v40, 1  ;;  %v508_v1 = vrot.slane %v3114_v40, 3  ;;  %v467_v4 = vrot.slane %v3114_v40, 2 }
  0xa5   : > { %1132 = vmatpush2.bf16.msra.mxu0 %v2501_v43  ;;  %v507_v43 = vrot.slane %v3094_v25, 3 }
  0xa6   : > { %1245 = vmatpush2.bf16.msra.mxu1 %v2502_v44  ;;  %1133 = vmatprep.subr.bf16.mxu0 %v2503_v46  ;;  %v493_v44 = vpack.c.bf16 %v490_v33, %v491_v34  ;;  %v447_v46 = vsel %vm435_vm0, %v420_v27, %v421_v28 }
  0xa7   : > { %1246 = vmatprep.subr.bf16.mxu1 %v2505_v47  ;;  %v448_v47 = vsel %vm435_vm0, %v419_v61, %v420_v27  ;;  %v425_v61 = vrot.slane %v3117_v41, 1  ;;  %v3186_v28 = vsel %vm517_vm1, %v507_v43, %v508_v1 }
  0xa9   : > { %1134 = vmatpush2.bf16.msra.mxu0 %v2507_v48  ;;  %v3128_v48 = vld [vmem:[%s3019_s10 + $0x28] sm:$0xff]  }
  0xaa   : > { %1247 = vmatpush2.bf16.msra.mxu1 %v2508_v53  ;;  %1135 = vmatprep.subr.bf16.mxu0 %v2509_v54  ;;  %v2534_v53 = vld [vmem:[#allocation5 + $0x270] ss:$8 sps:$4 sm:$0xff]   ;;  %v529_v54 = vsel %vm517_vm1, %v504_v29, %v505_v30 }
  0xab   : > { %1248 = vmatprep.subr.bf16.mxu1 %v2511_v55  ;;  %v530_v55 = vsel %vm517_vm1, %v503_v62, %v504_v29  ;;  %v468_v62 = vrot.slane %v3117_v41, 2  ;;  %v3189_v29 = vld [vmem:[%s3019_s10 + $0x38] sm:$0xff]  }
  0xac   : > { %v535_v5 = vpack.c.bf16 %v529_v54, %v530_v55 }
  0xad   : > { %1136 = vmatpush2.bf16.msra.mxu0 %v2513_v63  ;;  %v2540_v63 = vld [vmem:[#allocation5 + $0x264] ss:$8 sps:$4 sm:$0xff]  }
  0xae   : > { %1249 = vmatpush2.bf16.msra.mxu1 %v2514_v2  ;;  %1137 = vmatprep.subr.bf16.mxu0 %v2515_v3  ;;  %v509_v2 = vrot.slane %v3117_v41, 3  ;;  %v453_v3 = vpack.c.bf16 %v447_v46, %v448_v47 }
  0xaf   : > { %1250 = vmatprep.subr.bf16.mxu1 %v2517_v6  ;;  %v488_v6 = vsel %vm476_vm2, %v463_v35, %v464_v36  ;;  %v2542_v35 = vld [vmem:[#allocation5 + $0x250] ss:$8 sps:$4 sm:$0xff]  }
  0xb0   : > { %v3182_v27 = vsel %vm517_vm1, %v508_v1, %v509_v2  ;;  %v494_v34 = vpack.c.bf16 %v488_v6, %v489_v7  ;;  %v543_v7 = vrot.slane %v3045_v52, 4 }
  0xb1   : > { %1138 = vmatpush2.bf16.msra.mxu0 %v2519_v10  ;;  %v3151_v10 = vunpack.c.h.bf16 %v3097_v26  ;;  %v537_v47 = vpack.c.bf16 %v3182_v27, %v3186_v28  ;;  %v2550_v28 = vld [vmem:[#allocation5 + $0x230] ss:$8 sps:$4 sm:$0xff]  }
  0xb2   : > { %1251 = vmatpush2.bf16.msra.mxu1 %v2520_v11  ;;  %1139 = vmatprep.subr.bf16.mxu0 %v2521_v12  ;;  %v3154_v11 = vunpack.c.l.bf16 %v3128_v48  ;;  %v2538_v12 = vld [vmem:[#allocation5 + $0x260] ss:$8 sps:$4 sm:$0xff]  }
  0xb3   : > { %1252 = vmatprep.subr.bf16.mxu1 %v2523_v14  ;;  %v445_v14 = vsel %vm435_vm0, %v422_v38, %v423_v39 }
  0xb4   : > { %v427_v33 = vrot.slane %v3154_v11, 1  ;;  %v454_v38 = vpack.c.bf16 %v445_v14, %v446_v8 }
  0xb5   : > { %1140 = vmatpush2.bf16.msra.mxu0 %v2525_v17  ;;  %v527_v17 = vsel %vm517_vm1, %v506_v42, %v507_v43  ;;  %v3206_v43 = vunpack.c.l.bf16 %v3189_v29 }
  0xb6   : > { %1253 = vmatpush2.bf16.msra.mxu1 %v2526_v18  ;;  %1141 = vmatprep.subr.bf16.mxu0 %v2527_v22  ;;  %v528_v18 = vsel %vm517_vm1, %v505_v30, %v506_v42  ;;  %v3174_v22 = vsel %vm435_vm0, %v423_v39, %v424_v0  ;;  %v3195_v30 = vsel %vm476_vm2, %v467_v4, %v468_v62  ;;  %v2548_v42 = vld [vmem:[#allocation5 + $0x244] ss:$8 sps:$4 sm:$0xff]  }
  0xb7   : > { %1254 = vmatprep.subr.bf16.mxu1 %v2529_v23  ;;  %v3178_v23 = vsel %vm435_vm0, %v424_v0, %v425_v61  ;;  %v536_v39 = vpack.c.bf16 %v527_v17, %v528_v18  ;;  %v431_v6 = vrot.slane %v3206_v43, 1  ;;  %v515_v8 = vrot.slane %v3206_v43, 3 }
  0xb8   : > { %v455_v46 = vpack.c.bf16 %v3178_v23, %v3174_v22  ;;  %v545_v17 = vrot.slane %v3081_v15, 4 }
  0xb9   : > { %1142 = vmatpush2.bf16.msra.mxu0 %v2531_v31  ;;  %v3199_v31 = vsel %vm476_vm2, %v466_v60, %v467_v4  ;;  %v470_v60 = vrot.slane %v3154_v11, 2  ;;  %v3244_v4 = vld [vmem:[%s3019_s10 + $0x30] sm:$0xff]   ;;  %s2031_s10 = scalar_lea.sflag [#allocation4], %s3015_s1 }
  0xba   : > { %1255 = vmatpush2.bf16.msra.mxu1 %v2532_v32  ;;  %1337 = vmatprep.subr.bf16.mxu0 %v2536_v37  ;;  %v426_v32 = vrot.slane %v3151_v10, 1  ;;  %v511_v37 = vrot.slane %v3154_v11, 3  ;;  %v3296_v23 = vunpack.c.l.bf16 %v3244_v4 }
  0xbc   : > { %1144 = vmatmul.mubr.bf16.vlgmr.msra.gmra.mxu0 %v3036_v49  ;;  %v3170_v49 = vsel %vm476_vm2, %v464_v36, %v465_v58  ;;  %v510_v36 = vrot.slane %v3151_v10, 3  ;;  %v3220_v54 = vsel %vm435_vm0, %v426_v32, %v427_v33  ;;  %v3224_v55 = vsel %vm435_vm0, %v425_v61, %v426_v32 }
  0xbd   : > { %1257 = vmatmul.mubr.bf16.vlgmr.msra.gmra.mxu1 %v493_v44  ;;  %1338 = vmatpush1.bf16.msra.mxu0 %v2534_v53  ;;  %v495_v44 = vpack.c.bf16 %v3166_v20, %v3170_v49  ;;  %v496_v53 = vpack.c.bf16 %v3195_v30, %v3199_v31  ;;  %v469_v58 = vrot.slane %v3151_v10, 2  ;;  %v3240_v61 = vunpack.c.h.bf16 %v3189_v29 }
  0xbe   : > { %1153 = vmatprep.mubr.bf16.mxu0 %v453_v3  ;;  %1266 = vmatprep.mubr.bf16.mxu1 %v535_v5  ;;  %v3233_v0 = vsel %vm517_vm1, %v510_v36, %v511_v37  ;;  %v3237_v1 = vsel %vm517_vm1, %v509_v2, %v510_v36  ;;  %v542_v3 = vrot.slane %v3042_v51, 4  ;;  %v3247_v5 = vunpack.c.h.bf16 %v3128_v48  ;;  %v2556_v36 = vld [vmem:[#allocation5 + $0x224] ss:$8 sps:$4 sm:$0xff]  }
  0xbf   : > { %1339 = vmatprep.subr.bf16.mxu0 %v2540_v63  ;;  %v2546_v63 = vld [vmem:[#allocation5 + $0x240] ss:$8 sps:$4 sm:$0xff]   ;;  %v544_v2 = vrot.slane %v3050_v56, 4  ;;  %v516_v14 = vrot.slane %v3240_v61, 3  ;;  %v456_v18 = vpack.c.bf16 %v3220_v54, %v3224_v55  ;;  %v546_v56 = vrot.slane %v3084_v16, 4 }
  0xc0   : > { %v3266_v52 = vsel %vm558_vm3, %v542_v3, %v543_v7  ;;  %v538_v22 = vpack.c.bf16 %v3233_v0, %v3237_v1  ;;  %v3303_v32 = vunpack.c.h.bf16 %v3244_v4  ;;  %v550_v0 = vrot.slane %v3117_v41, 4  ;;  %v2562_v41 = vld [vmem:[#allocation5 + $0x200] ss:$8 sps:$4 sm:$0xff]  }
  0xc1   : > { %1340 = vmatpush1.bf16.msra.mxu0 %v2538_v12  ;;  %v432_v12 = vrot.slane %v3240_v61, 1  ;;  %v3260_v20 = vsel %vm558_vm3, %v543_v7, %v544_v2  ;;  %v3291_v16 = vsel %vm517_vm1, %v516_v14, %v501_v59  ;;  %v551_v1 = vrot.slane %v3151_v10, 4 }
  0xc2   : > { %1341 = vmatprep.subr.bf16.mxu0 %v2544_v21  ;;  %v3285_v21 = vsel %vm517_vm1, %v515_v8, %v516_v14  ;;  %v552_v7 = vrot.slane %v3154_v11, 4  ;;  %v2560_v14 = vld [vmem:[#allocation5 + $0x214] ss:$8 sps:$4 sm:$0xff]  }
  0xc3   : > { %v3273_v15 = vsel %vm435_vm0, %v431_v6, %v432_v12  ;;  %v3279_v49 = vsel %vm435_vm0, %v432_v12, %v417_v57  ;;  %v3350_v12 = vsel %vm558_vm3, %v550_v0, %v551_v1 }
  0xc4   : > { %1154 = vmatmul.mubr.bf16.gmra.mxu0 %v3039_v50  ;;  %v2552_v50 = vld [vmem:[#allocation5 + $0x234] ss:$8 sps:$4 sm:$0xff]   ;;  %v459_v57 = vpack.c.bf16 %v3279_v49, %v3273_v15  ;;  %v3965_v15 = vpack.c.bf16 %v3260_v20, %v3266_v52 }
  0xc5   : > { %1267 = vmatmul.mubr.bf16.gmra.mxu1 %v494_v34  ;;  %1163 = vmatprep.mubr.bf16.mxu0 %v454_v38  ;;  %v3309_v34 = vsel %vm558_vm3, %v545_v17, %v546_v56 }
  0xc6   : > { %1276 = vmatprep.mubr.bf16.mxu1 %v536_v39  ;;  %1342 = vmatpush1.bf16.msra.mxu0 %v2542_v35  ;;  %v3313_v35 = vsel %vm558_vm3, %v544_v2, %v545_v17  ;;  %v547_v39 = vrot.slane %v3091_v24, 4  ;;  %v3346_v2 = vsel %vm558_vm3, %v551_v1, %v552_v7  ;;  %v428_v1 = vrot.slane %v3247_v5, 1 }
  0xc7   : > { %1343 = vmatprep.subr.bf16.mxu0 %v2548_v42  ;;  %v548_v42 = vrot.slane %v3094_v25, 4  ;;  %v512_v17 = vrot.slane %v3247_v5, 3  ;;  %v3966_v49 = vpack.c.bf16 %v3309_v34, %v3313_v35  ;;  %v3969_v20 = vpack.c.bf16 %v3346_v2, %v3350_v12  ;;  %v2567_v35 = vld [vmem:[#allocation8 + $0x70] sm:$0xff]   ;;  %v2570_v2 = vld [vmem:[#allocation8 + $0x28] sm:$0xff]  }
  0xc8   : > { %v3331_v25 = vsel %vm558_vm3, %v546_v56, %v547_v39  ;;  %v429_v56 = vrot.slane %v3296_v23, 1  ;;  %v440_v31 = vsel %vm435_vm0, %v427_v33, %v428_v1  ;;  %v430_v33 = vrot.slane %v3303_v32, 1 }
  0xc9   : > { %v3327_v24 = vsel %vm558_vm3, %v547_v39, %v548_v42  ;;  %v522_v10 = vsel %vm517_vm1, %v511_v37, %v512_v17 }
  0xca   : > { %1344 = vmatpush1.bf16.msra.mxu0 %v2546_v63  ;;  %v549_v63 = vrot.slane %v3114_v40, 4  ;;  %v554_v40 = vrot.slane %v3296_v23, 4  ;;  %v439_v30 = vsel %vm435_vm0, %v428_v1, %v429_v56  ;;  %v2571_v1 = vld [vmem:[#allocation8 + $0x60] sm:$0xff]  }
  0xcb   : > { %1345 = vmatprep.subr.bf16.mxu0 %v2552_v50  ;;  %v553_v50 = vrot.slane %v3247_v5, 4  ;;  %v457_v54 = vpack.c.bf16 %v439_v30, %v440_v31  ;;  %v2573_v30 = vld [vmem:[#allocation8 + $0x58] sm:$0xff]  }
  0xcc   : > { %1164 = vmatmul.mubr.bf16.gmra.mxu0 %v3075_v9  ;;  %v3335_v9 = vsel %vm558_vm3, %v548_v42, %v549_v63  ;;  %v2574_v31 = vld [vmem:[#allocation8 + $0x18] sm:$0xff]  }
  0xcd   : > { %1277 = vmatmul.mubr.bf16.gmra.mxu1 %v495_v44  ;;  %1173 = vmatprep.mubr.bf16.mxu0 %v455_v46  ;;  %v2554_v44 = vld [vmem:[#allocation5 + $0x220] ss:$8 sps:$4 sm:$0xff]   ;;  %v3362_v39 = vsel %vm558_vm3, %v552_v7, %v553_v50  ;;  %v513_v46 = vrot.slane %v3296_v23, 3  ;;  %v2558_v7 = vld [vmem:[#allocation5 + $0x210] ss:$8 sps:$4 sm:$0xff]  }
  0xce   : > { %1286 = vmatprep.mubr.bf16.mxu1 %v537_v47  ;;  %1346 = vmatpush1.bf16.msra.mxu0 %v2550_v28  ;;  %v3342_v47 = vsel %vm558_vm3, %v549_v63, %v550_v0  ;;  %v3358_v28 = vsel %vm558_vm3, %v553_v50, %v554_v40  ;;  %v556_v63 = vrot.slane %v3206_v43, 4  ;;  %v557_v0 = vrot.slane %v3240_v61, 4 }
  0xcf   : > { %1347 = vmatprep.subr.bf16.mxu0 %v2556_v36  ;;  %v555_v36 = vrot.slane %v3303_v32, 4  ;;  %v3970_v52 = vpack.c.bf16 %v3358_v28, %v3362_v39 }
  0xd0   : > { %v3383_v38 = vsel %vm558_vm3, %v556_v63, %v557_v0  ;;  %v3389_v59 = vsel %vm558_vm3, %v557_v0, %v542_v3  ;;  %v482_v3 = vsel %vm476_vm2, %v469_v58, %v470_v60 }
  0xd1   : > { %v3375_v50 = vsel %vm558_vm3, %v555_v36, %v556_v63  ;;  %v3379_v42 = vsel %vm558_vm3, %v554_v40, %v555_v36  ;;  %v582_v27 = vpack.c.bf16 %v3389_v59, %v3383_v38  ;;  %v438_v40 = vsel %vm435_vm0, %v429_v56, %v430_v33 }
  0xd2   : > { %1348 = vmatpush1.bf16.msra.mxu0 %v2554_v44  ;;  %v2564_v44 = vld [vmem:[#allocation5 + $0x204] ss:$8 sps:$4 sm:$0xff]   ;;  %v581_v19 = vpack.c.bf16 %v3375_v50, %v3379_v42  ;;  %v474_v63 = vrot.slane %v3206_v43, 2 }
  0xd3   : > { %1349 = vmatprep.subr.bf16.mxu0 %v2560_v14 }
  0xd4   : > { %1174 = vmatmul.mubr.bf16.gmra.mxu0 %v3078_v13  ;;  %v483_v13 = vsel %vm476_vm2, %v468_v62, %v469_v58  ;;  %v471_v58 = vrot.slane %v3247_v5, 2 }
  0xd5   : > { %1287 = vmatmul.mubr.bf16.gmra.mxu1 %v496_v53  ;;  %1183 = vmatprep.mubr.bf16.mxu0 %v456_v18  ;;  %v521_v53 = vsel %vm517_vm1, %v512_v17, %v513_v46  ;;  %v497_v62 = vpack.c.bf16 %v482_v3, %v483_v13  ;;  %v472_v18 = vrot.slane %v3296_v23, 2  ;;  %v437_v23 = vsel %vm435_vm0, %v430_v33, %v431_v6 }
  0xd6   : > { %1296 = vmatprep.mubr.bf16.mxu1 %v538_v22  ;;  %1350 = vmatpush1.bf16.msra.mxu0 %v2558_v7  ;;  %v539_v55 = vpack.c.bf16 %v521_v53, %v522_v10  ;;  %v514_v22 = vrot.slane %v3303_v32, 3  ;;  %v481_v5 = vsel %vm476_vm2, %v470_v60, %v471_v58  ;;  %v458_v17 = vpack.c.bf16 %v437_v23, %v438_v40  ;;  %v2572_v7 = vld [vmem:[#allocation8 + $0x20] sm:$0xff]  }
  0xd7   : > { %1351 = vmatprep.subr.bf16.mxu0 %v2564_v44  ;;  %v480_v37 = vsel %vm476_vm2, %v471_v58, %v472_v18  ;;  %v473_v60 = vrot.slane %v3303_v32, 2  ;;  %v3964_v32 = vrot.slane %v3042_v51, 2  ;;  %v3967_v51 = vpack.c.bf16 %v3327_v24, %v3331_v25  ;;  %v2568_v24 = vld [vmem:[#allocation8 + $0x30] sm:$0xff]   ;;  %v2579_v23 = vld [vmem:[#allocation8 + $0x40] sm:$0xff]  }
  0xd8   : > { %v520_v14 = vsel %vm517_vm1, %v513_v46, %v514_v22  ;;  %v498_v11 = vpack.c.bf16 %v480_v37, %v481_v5  ;;  %v475_v46 = vrot.slane %v3240_v61, 2  ;;  %v2577_v37 = vld [vmem:[#allocation8 + $0x48] sm:$0xff]  }
  0xd9   : > { %v478_v6 = vsel %vm476_vm2, %v473_v60, %v474_v63  ;;  %v2578_v5 = vld [vmem:[#allocation8 + $0x8] sm:$0xff]  }
  0xda   : > { %1352 = vmatpush1.bf16.msra.mxu0 %v2562_v41  ;;  %v477_v43 = vsel %vm476_vm2, %v474_v63, %v475_v46  ;;  %v492_v0 = vsel %vm476_vm2, %v475_v46, %v3964_v32  ;;  %v3942_v46 = vmov 0.0  }
  0xdb   : > { %v500_v61 = vpack.c.bf16 %v492_v0, %v477_v43 }
  0xdc   : > { %1184 = vmatmul.mubr.bf16.gmra.mxu0 %v3097_v26  ;;  %v519_v26 = vsel %vm517_vm1, %v514_v22, %v515_v8  ;;  %v479_v8 = vsel %vm476_vm2, %v472_v18, %v473_v60 }
  0xdd   : > { %1297 = vmatmul.mubr.bf16.gmra.mxu1 %v497_v62  ;;  %1193 = vmatprep.mubr.bf16.mxu0 %v457_v54  ;;  %v540_v36 = vpack.c.bf16 %v519_v26, %v520_v14  ;;  %v499_v56 = vpack.c.bf16 %v478_v6, %v479_v8  ;;  %v2575_v54 = vld [vmem:[#allocation8 + $0x50] sm:$0xff]   ;;  %v2580_v14 = vld [vmem:[#allocation8] sm:$0xff]  }
  0xde   : > { %1306 = vmatprep.mubr.bf16.mxu1 %v539_v55  ;;  %v2576_v55 = vld [vmem:[#allocation8 + $0x10] sm:$0xff]  }
  0xe4   : > { %1194 = vmatmul.mubr.bf16.gmra.mxu0 %v3128_v48  ;;  %v3963_v48 = vpack.c.bf16 %v3291_v16, %v3285_v21  ;;  %v2565_v21 = vld [vmem:[#allocation8 + $0x78] sm:$0xff]  }
  0xe5   : > { %1307 = vmatmul.mubr.bf16.gmra.mxu1 %v498_v11  ;;  %1203 = vmatprep.mubr.bf16.mxu0 %v458_v17  ;;  %v2566_v16 = vld [vmem:[#allocation8 + $0x38] sm:$0xff]  }
  0xe6   : > { %1316 = vmatprep.mubr.bf16.mxu1 %v540_v36  ;;  %2290 = vmatprep.subr.bf16.mxu1 %v2565_v21 }
  0xe7   : > { %2291 = vmatpush3.bf16.msra.mxu1 %v2566_v16 }
  0xe8   : > { %2292 = vmatprep.subr.bf16.mxu1 %v2567_v35 }
  0xeb   : > { %2293 = vmatpush3.bf16.msra.mxu1 %v2568_v24 }
  0xec   : > { %1204 = vmatmul.mubr.bf16.gmra.mxu0 %v3244_v4  ;;  %v2814_v4 = vmov 0  }
  0xed   : > { %1317 = vmatmul.mubr.bf16.gmra.mxu1 %v499_v56  ;;  %1213 = vmatprep.mubr.bf16.mxu0 %v459_v57 }
  0xee   : > { %1326 = vmatprep.mubr.bf16.mxu1 %v3963_v48 }
  0xf4   : > { %1214 = vmatmul.mubr.bf16.gmra.mxu0 %v3189_v29  ;;  %v3968_v29 = vpack.c.bf16 %v3342_v47, %v3335_v9 }
  0xf5   : > { %1327 = vmatmul.mubr.bf16.gmra.mxu1 %v500_v61  ;;  %1369 = vmatprep.mubr.bf16.mxu0 %v2814_v4 }
  0xfc   : > { %1370 = vmatmul.mubr.bf16.vlgmr.msra.gmra.mxu0 %v3965_v15 }
  0xfd   : > { %1379 = vmatprep.mubr.bf16.mxu0 %v2814_v4 }
 0x104   : > { %1380 = vmatmul.mubr.bf16.gmra.mxu0 %v3966_v49 }
 0x105   : > { %1389 = vmatprep.mubr.bf16.mxu0 %v2814_v4 }
 0x10c   : > { %1390 = vmatmul.mubr.bf16.gmra.mxu0 %v3967_v51 }
 0x10d   : > { %1399 = vmatprep.mubr.bf16.mxu0 %v2814_v4 }
 0x114   : > { %1400 = vmatmul.mubr.bf16.gmra.mxu0 %v3968_v29 }
 0x115   : > { %1409 = vmatprep.mubr.bf16.mxu0 %v2814_v4 }
 0x11c   : > { %1410 = vmatmul.mubr.bf16.gmra.mxu0 %v3969_v20 }
 0x11d   : > { %1419 = vmatprep.mubr.bf16.mxu0 %v2814_v4 }
 0x124   : > { %1420 = vmatmul.mubr.bf16.gmra.mxu0 %v3970_v52 }
 0x125   : > { %1429 = vmatprep.mubr.bf16.mxu0 %v2814_v4 }
 0x12c   : > { %1430 = vmatmul.mubr.bf16.gmra.mxu0 %v581_v19 }
 0x12d   : > { %1439 = vmatprep.mubr.bf16.mxu0 %v2814_v4 }
 0x134   : > { %1440 = vmatmul.mubr.bf16.gmra.mxu0 %v582_v27  ;;  %v2569_v27 = vld [vmem:[#allocation8 + $0x68] sm:$0xff]  }
 0x135   : > { %2294 = vmatprep.subr.bf16.mxu1 %v2569_v27 }
 0x136   : > { %2295 = vmatpush3.bf16.msra.mxu1 %v2570_v2 }
 0x137   : > { %2296 = vmatprep.subr.bf16.mxu1 %v2571_v1 }
 0x13a   : > { %2297 = vmatpush3.bf16.msra.mxu1 %v2572_v7 }
 0x13b   : > { %2298 = vmatprep.subr.bf16.mxu1 %v2573_v30 }
 0x13e   : > { %2299 = vmatpush3.bf16.msra.mxu1 %v2574_v31 }
 0x13f   : > { %2300 = vmatprep.subr.bf16.mxu1 %v2575_v54 }
 0x142   : > { %2301 = vmatpush3.bf16.msra.mxu1 %v2576_v55 }
 0x143   : > { %2302 = vmatprep.subr.bf16.mxu1 %v2577_v37 }
 0x146   : > { %2303 = vmatpush3.bf16.msra.mxu1 %v2578_v5 }
 0x147   : > { %2304 = vmatprep.subr.bf16.mxu1 %v2579_v23  ;;  %v3614_v23 = vld [vmem:[#allocation7] sm:$0xff] }
 0x148   : > { %vm1454_vm4 = vcmp.gt.f32.partialorder %v3614_v23, 0.0 }
 0x14a   : > { %2305 = vmatpush3.bf16.msra.mxu1 %v2580_v14  ;;  %v3616_v14 = vld [vmem:[#allocation7 + $0x10] sm:$0xff] }
 0x14b   : > { %2321 = vmatprep.subr.bf16.mxu1 %v3942_v46  ;;  %vm1456_vm5 = vcmp.gt.f32.partialorder %v3616_v14, 0.0 }
 0x17c   : > { %v3495_v57 = vpop.f32.mrf.mxu0 }
 0x17d   : > { %v3497_v34 = vpop.f32.mrf.mxu1 }
 0x17e   : > { %v3499_v25 = vpop.f32.mrf.mxu0  ;;  %v1259_v37 = vadd.f32 %v3497_v34, %v3495_v57  ;;  %v1610_v57 = vld [vmem:[%s3928_s2] sm:$0x3]  ;;  %v3628_v34 = vld [vmem:[#allocation7 + $0x18] sm:$0xff] }
 0x17f   : > { %v3501_v9 = vpop.f32.mrf.mxu1  ;;  %vm1457_vm7 = vcmp.gt.f32.partialorder %v3628_v34, 0.0 }
 0x180   : > { %v3503_v19 = vpop.f32.mrf.mxu0 }
 0x181   : > { %v3505_v59 = vpop.f32.mrf.mxu1 }
 0x182   : > { %v3507_v38 = vpop.f32.mrf.mxu0 }
 0x183   : > { %v3509_v47 = vpop.f32.mrf.mxu1 }
 0x184   : > { %v3511_v12 = vpop.f32.mrf.mxu0 }
 0x185   : > { %v3513_v28 = vpop.f32.mrf.mxu1 }
 0x186   : > { %v3515_v39 = vpop.f32.mrf.mxu0 }
 0x187   : > { %v3517_v42 = vpop.f32.mrf.mxu1 }
 0x188   : > { %v3519_v50 = vpop.f32.mrf.mxu0 }
 0x189   : > { %v3521_v44 = vpop.f32.mrf.mxu1 }
 0x18a   : > { %v3523_v3 = vpop.f32.mrf.mxu0 }
 0x18b   : > { %v3525_v13 = vpop.f32.mrf.mxu1 }
 0x18c   : > { %v3527_v53 = vpop.f32.mrf.mxu0 }
 0x18d   : > { %v3529_v10 = vpop.f32.mrf.mxu1 }
 0x18e   : > { %v3531_v41 = vpop.f32.mrf.mxu0 }
 0x18f   : > { %v3533_v62 = vpop.f32.mrf.mxu1 }
 0x190   : > { %v3535_v58 = vpop.f32.mrf.mxu0 }
 0x191   : > { %v3537_v18 = vpop.f32.mrf.mxu1 }
 0x192   : > { %v3539_v33 = vpop.f32.mrf.mxu0 }
 0x193   : > { %v3541_v22 = vpop.f32.mrf.mxu1 }
 0x194   : > { %v3543_v40 = vpop.f32.mrf.mxu0 }
 0x195   : > { %v3545_v26 = vpop.f32.mrf.mxu1 }
 0x196   : > { %v3547_v11 = vpop.f32.mrf.mxu0 }
 0x197   : > { %v3549_v17 = vpop.f32.mrf.mxu1 }
 0x198   : > { %v3551_v36 = vpop.f32.mrf.mxu0 }
 0x199   : > { %v3553_v60 = vpop.f32.mrf.mxu1 }
 0x19a   : > { %v3555_v63 = vpop.f32.mrf.mxu0 }
 0x19b   : > { %v3557_v6 = vpop.f32.mrf.mxu1 }
 0x19c   : > { %v3559_v8 = vpop.f32.mrf.mxu0 }
 0x19d   : > { %v3561_v56 = vpop.f32.mrf.mxu1 }
 0x19e   : > { %v3564_v48 = vpop.f32.mrf.mxu0 }
 0x19f   : > { %v3566_v43 = vpop.f32.mrf.mxu1 }
 0x1a0   : > { %v3568_v32 = vpop.f32.mrf.mxu0 }
 0x1a1   : > { %v3570_v0 = vpop.f32.mrf.mxu1 }
 0x1a2   : > { %v3572_v61 = vpop.f32.mrf.mxu0 }
 0x1a3   : > { %v3576_v15 = vpop.f32.mrf.mxu1 }
 0x1a4   : > { %v3574_v4 = vpop.f32.mrf.mxu0 }
 0x1a5   : > { %v3582_v29 = vpop.f32.mrf.mxu1 }
 0x1a6   : > { %v3578_v49 = vpop.f32.mrf.mxu0 }
 0x1a7   : > { %v3588_v21 = vpop.f32.mrf.mxu1 }
 0x1a8   : > { %v3580_v51 = vpop.f32.mrf.mxu0 }
 0x1a9   : > { %v3594_v24 = vpop.f32.mrf.mxu1 }
 0x1aa   : > { %v3584_v20 = vpop.f32.mrf.mxu0 }
 0x1ab   : > { %v3600_v1 = vpop.f32.mrf.mxu1 }
 0x1ac   : > { %v3586_v52 = vpop.f32.mrf.mxu0 }
 0x1ad   : > { %3971 = vst [vmem:[#allocation16_spill] sm:$0xff] %v3586_v52  ;;  %v3606_v31 = vpop.f32.mrf.mxu1 }
 0x1ae   : > { %v3590_v16 = vpop.f32.mrf.mxu0  ;;  %3978 = vst [vmem:[#allocation23_spill] sm:$0xff] %v3606_v31 }
 0x1af   : > { %3972 = vst [vmem:[#allocation17_spill] sm:$0xff] %v3590_v16  ;;  %v3612_v5 = vpop.f32.mrf.mxu1 }
 0x1b0   : > { %v3592_v35 = vpop.f32.mrf.mxu0  ;;  %3980 = vst [vmem:[#allocation25_spill] sm:$0xff] %v3612_v5 }
 0x1b1   : > { %3973 = vst [vmem:[#allocation18_spill] sm:$0xff] %v3592_v35  ;;  %v1618_v35 = vsub.s32 1, %v3033_v45 }
 0x1b2   : > { %v3596_v27 = vpop.f32.mrf.mxu0 }
 0x1b3   : > { %3974 = vst [vmem:[#allocation19_spill] sm:$0xff] %v3596_v27  ;;  %v3623_v27 = vld [vmem:[#allocation7 + $0x8] sm:$0xff]  ;;  %v3645_v52 = vrot.slane %v1610_v57, %v1618_v35 }
 0x1b4   : > { %v3598_v2 = vpop.f32.mrf.mxu0  ;;  %vm1455_vm6 = vcmp.gt.f32.partialorder %v3623_v27, 0.0 }
 0x1b5   : > { %3975 = vst [vmem:[#allocation20_spill] sm:$0xff] %v3598_v2  ;;  %v1614_v2 = vsub.s32 0, %v3033_v45 }
 0x1b6   : > { %v3602_v7 = vpop.f32.mrf.mxu0 }
 0x1b7   : > { %3976 = vst [vmem:[#allocation21_spill] sm:$0xff] %v3602_v7  ;;  %v1263_v7 = vadd.f32 %v3505_v59, %v3503_v19 }
 0x1b8   : > { %v3604_v30 = vpop.f32.mrf.mxu0 }
 0x1b9   : > { %3977 = vst [vmem:[#allocation22_spill] sm:$0xff] %v3604_v30  ;;  %v1261_v30 = vadd.f32 %v3501_v9, %v3499_v25  ;;  %v1265_v25 = vadd.f32 %v3509_v47, %v3507_v38  ;;  %v3635_v9 = vpop.f32.mrf.mxu1  ;;  %v1269_v38 = vadd.f32 %v3513_v28, %v3511_v12  ;;  %v1271_v47 = vadd.f32 %v3517_v42, %v3515_v39 }
 0x1ba   : > { %v3608_v54 = vpop.f32.mrf.mxu0  ;;  %v1281_v28 = vadd.f32 %v3533_v62, %v3531_v41  ;;  %v1283_v39 = vadd.f32 %v3537_v18, %v3535_v58  ;;  %v3677_v41 = vadd.f32 %v3553_v60, %v3551_v36  ;;  %v3681_v62 = vadd.f32 %v3557_v6, %v3555_v63 }
 0x1bb   : > { %3979 = vst [vmem:[#allocation24_spill] sm:$0xff] %v3608_v54  ;;  %v3693_v36 = vadd.f32 %v3570_v0, %v3568_v32  ;;  %v3697_v60 = vadd.f32 %v3576_v15, %v3572_v61  ;;  %v3709_v32 = vadd.f32 %v3588_v21, %v3578_v49 }
 0x1bc   : > { %v1371_v55 = vpop.f32.mrf.mxu0 }
 0x1bd   : > { %v1372_v54 = vadd.f32 %v1371_v55, %v1259_v37  ;;  %v3638_v55 = vrot.slane %v1610_v57, %v1614_v2  ;;  %v3713_v57 = vadd.f32 %v3594_v24, %v3580_v51  ;;  %v3983_v24 = vld [vmem:[#allocation17_spill] sm:$0xff] }
 0x1be   : > { %v1373_v46 = vpop.f32.mrf.mxu0 }
 0x1bf   : > { %v1374_v19 = vadd.f32 %v1373_v46, %v1261_v30  ;;  %v1466_v45 = vsel %vm1454_vm4, %v1372_v54, -1e+30  ;;  %v1273_v46 = vadd.f32 %v3521_v44, %v3519_v50  ;;  %v1275_v30 = vadd.f32 %v3525_v13, %v3523_v3 }
 0x1c0   : > { %v1375_v5 = vpop.f32.mrf.mxu0  ;;  %v1279_v54 = vadd.f32 %v3529_v10, %v3527_v53  ;;  %v1285_v3 = vadd.f32 %v3541_v22, %v3539_v33  ;;  %v3669_v13 = vadd.f32 %v3545_v26, %v3543_v40  ;;  %v3673_v53 = vadd.f32 %v3549_v17, %v3547_v11 }
 0x1c1   : > { %v1376_v59 = vadd.f32 %v1375_v5, %v1263_v7  ;;  %v1324_v5 = vpop.f32.mrf.mxu1  ;;  %v1467_v35 = vsel %vm1455_vm6, %v1374_v19, -1e+30  ;;  %v3685_v22 = vadd.f32 %v3561_v56, %v3559_v8  ;;  %v3689_v40 = vadd.f32 %v3566_v43, %v3564_v48 }
 0x1c2   : > { %v1377_v37 = vpop.f32.mrf.mxu0  ;;  %v3701_v8 = vadd.f32 %v3582_v29, %v3574_v4  ;;  %v3717_v4 = vadd.f32 %v3600_v1, %v3584_v20  ;;  %v3985_v1 = vld [vmem:[#allocation18_spill] sm:$0xff] }
 0x1c3   : > { %v1468_v16 = vsel %vm1456_vm5, %v1376_v59, -1e+30  ;;  %v1378_v31 = vadd.f32 %v1377_v37, %v1265_v25  ;;  %v1328_v26 = vpop.f32.mrf.mxu1 }
 0x1c4   : > { %v1498_v2 = vmax.f32 %v1466_v45, %v1468_v16  ;;  %v1381_v7 = vpop.f32.mrf.mxu0 }
 0x1c5   : > { %v1469_v12 = vsel %vm1457_vm7, %v1378_v31, -1e+30  ;;  %v1382_v10 = vadd.f32 %v1381_v7, %v1269_v38  ;;  %v1330_v29 = vpop.f32.mrf.mxu1  ;;  %v3981_v38 = vld [vmem:[#allocation16_spill] sm:$0xff] }
 0x1c6   : > { %v1499_v42 = vrot.slane %v1498_v2, 4  ;;  %v1505_v50 = vmax.f32 %v1467_v35, %v1469_v12  ;;  %v1383_v44 = vpop.f32.mrf.mxu0 }
 0x1c7   : > { %v1384_v11 = vadd.f32 %v1383_v44, %v1271_v47  ;;  %v1470_v56 = vsel %vm1454_vm4, %v1382_v10, -1e+30  ;;  %v3982_v47 = vld [vmem:[#allocation23_spill] sm:$0xff] }
 0x1c8   : > { %v1500_v58 = vmax.f32 %v1498_v2, %v1499_v42  ;;  %v1506_v18 = vrot.slane %v1505_v50, 4  ;;  %v1385_v33 = vpop.f32.mrf.mxu0  ;;  %v3725_v51 = vadd.f32 %v3982_v47, %v3981_v38  ;;  %v3733_v2 = vadd.f32 %v3635_v9, %v3985_v1  ;;  %v3986_v44 = vld [vmem:[#allocation19_spill] sm:$0xff]  ;;  %v3989_v38 = vld [vmem:[#allocation22_spill] sm:$0xff] }
 0x1c9   : > { %v1386_v17 = vadd.f32 %v1385_v33, %v1273_v46  ;;  %v1471_v25 = vsel %vm1455_vm6, %v1384_v11, -1e+30  ;;  %v3984_v46 = vld [vmem:[#allocation25_spill] sm:$0xff]  ;;  %v3736_v10 = vadd.f32 %v1324_v5, %v3986_v44  ;;  %v1332_v33 = vpop.f32.mrf.mxu1 }
 0x1ca   : > { %v1501_v63 = vrot.slane %v1500_v58, 2  ;;  %v1507_v6 = vmax.f32 %v1505_v50, %v1506_v18  ;;  %v1387_v16 = vpop.f32.mrf.mxu0  ;;  %v3729_v20 = vadd.f32 %v3984_v46, %v3983_v24  ;;  %v3758_v47 = vadd.f32 %v1332_v33, %v3989_v38 }
 0x1cb   : > { %v1472_v48 = vsel %vm1456_vm5, %v1386_v17, -1e+30  ;;  %v1388_v43 = vadd.f32 %v1387_v16, %v1275_v30 }
 0x1cc   : > { %v1502_v0 = vmax.f32 %v1500_v58, %v1501_v63  ;;  %v1508_v61 = vrot.slane %v1507_v6, 2  ;;  %v1512_v15 = vmax.f32 %v1470_v56, %v1472_v48  ;;  %v1391_v31 = vpop.f32.mrf.mxu0  ;;  %v3987_v58 = vld [vmem:[#allocation20_spill] sm:$0xff]  ;;  %v3988_v56 = vld [vmem:[#allocation21_spill] sm:$0xff] }
 0x1cd   : > { %v1473_v49 = vsel %vm1457_vm7, %v1388_v43, -1e+30  ;;  %v1392_v7 = vadd.f32 %v1391_v31, %v1279_v54  ;;  %v3739_v18 = vadd.f32 %v1328_v26, %v3987_v58  ;;  %v3743_v48 = vadd.f32 %v1330_v29, %v3988_v56  ;;  %v1334_v31 = vpop.f32.mrf.mxu1 }
 0x1ce   : > { %v1503_v21 = vrot.slane %v1502_v0, 1  ;;  %v1509_v19 = vmax.f32 %v1507_v6, %v1508_v61  ;;  %v1513_v59 = vrot.slane %v1512_v15, 4  ;;  %v1519_v37 = vmax.f32 %v1471_v25, %v1473_v49  ;;  %v1393_v45 = vpop.f32.mrf.mxu0 }
 0x1cf   : > { %v1394_v11 = vadd.f32 %v1393_v45, %v1281_v28  ;;  %v1474_v43 = vsel %vm1454_vm4, %v1392_v7, -1e+30  ;;  %v3990_v7 = vld [vmem:[#allocation24_spill] sm:$0xff] }
 0x1d0   : > { %v1504_v30 = vmax.f32 %v1502_v0, %v1503_v21  ;;  %v1510_v35 = vrot.slane %v1509_v19, 1  ;;  %v1514_v12 = vmax.f32 %v1512_v15, %v1513_v59  ;;  %v1520_v42 = vrot.slane %v1519_v37, 4  ;;  %v1395_v50 = vpop.f32.mrf.mxu0 }
 0x1d1   : > { %v1396_v17 = vadd.f32 %v1395_v50, %v1283_v39  ;;  %v1475_v25 = vsel %vm1455_vm6, %v1394_v11, -1e+30 }
 0x1d2   : > { %v1622_v63 = vadd.f32 %v3638_v55, %v1504_v30  ;;  %v1511_v6 = vmax.f32 %v1509_v19, %v1510_v35  ;;  %v1515_v9 = vrot.slane %v1514_v12, 2  ;;  %v1521_v16 = vmax.f32 %v1519_v37, %v1520_v42  ;;  %v1397_v54 = vpop.f32.mrf.mxu0 }
 0x1d3   : > { %v1476_v5 = vsel %vm1456_vm5, %v1396_v17, -1e+30  ;;  %v1398_v26 = vadd.f32 %v1397_v54, %v1285_v3  ;;  %v3762_v30 = vadd.f32 %v1334_v31, %v3990_v7 }
 0x1d4   : > { %v1638_v0 = vmax.f32 %v1622_v63, 0.0  ;;  %v1623_v28 = vadd.f32 %v3645_v52, %v1511_v6  ;;  %v1516_v39 = vmax.f32 %v1514_v12, %v1515_v9  ;;  %v1522_v61 = vrot.slane %v1521_v16, 2  ;;  %v1401_v15 = vpop.f32.mrf.mxu0 }
 0x1d5   : > { %v1526_v49 = vmax.f32 %v1474_v43, %v1476_v5  ;;  %v1477_v29 = vsel %vm1457_vm7, %v1398_v26, -1e+30  ;;  %v1402_v21 = vadd.f32 %v1401_v15, %v3669_v13 }
 0x1d6   : > { %v3755_v19 = vpack.c.bf16 %v1638_v0, %v1638_v0  ;;  %v1639_v59 = vmax.f32 %v1623_v28, 0.0  ;;  %v1517_v3 = vrot.slane %v1516_v39, 1  ;;  %v1523_v37 = vmax.f32 %v1521_v16, %v1522_v61  ;;  %v1403_v45 = vpop.f32.mrf.mxu0 }
 0x1d7   : > { %v1527_v24 = vrot.slane %v1526_v49, 4  ;;  %v1533_v46 = vmax.f32 %v1475_v25, %v1477_v29  ;;  %v1404_v1 = vadd.f32 %v1403_v45, %v3673_v53  ;;  %v1478_v58 = vsel %vm1454_vm4, %v1402_v21, -1e+30 }
 0x1d8   : > { %v3764_v35 = vpack.c.bf16 %v1639_v59, %v1639_v59  ;;  %v1518_v12 = vmax.f32 %v1516_v39, %v1517_v3  ;;  %v1524_v13 = vrot.slane %v1523_v37, 1  ;;  %v1405_v42 = vpop.f32.mrf.mxu0  ;;  %v1725_v11 = vunpack.c.l.b16 %v3755_v19 }
 0x1d9   : > { %v1528_v50 = vmax.f32 %v1526_v49, %v1527_v24  ;;  %v1534_v44 = vrot.slane %v1533_v46, 4  ;;  %v1406_v33 = vadd.f32 %v1405_v42, %v3677_v41  ;;  %v1479_v63 = vsel %vm1455_vm6, %v1404_v1, -1e+30 }
 0x1da   : > { %v1624_v53 = vadd.f32 %v3638_v55, %v1518_v12  ;;  %v1525_v17 = vmax.f32 %v1523_v37, %v1524_v13  ;;  %v1407_v6 = vpop.f32.mrf.mxu0  ;;  %v1726_v43 = vunpack.c.l.b16 %v3764_v35 }
 0x1db   : > { %v1529_v9 = vrot.slane %v1528_v50, 2  ;;  %v1535_v16 = vmax.f32 %v1533_v46, %v1534_v44  ;;  %v1480_v54 = vsel %vm1456_vm5, %v1406_v33, -1e+30  ;;  %v1408_v56 = vadd.f32 %v1407_v6, %v3681_v62 }
 0x1dc   : > { %v1640_v5 = vmax.f32 %v1624_v53, 0.0  ;;  %v1625_v41 = vadd.f32 %v3645_v52, %v1525_v17  ;;  %v1540_v26 = vmax.f32 %v1478_v58, %v1480_v54  ;;  %v1411_v0 = vpop.f32.mrf.mxu0 }
 0x1dd   : > { %v1530_v28 = vmax.f32 %v1528_v50, %v1529_v9  ;;  %v1536_v39 = vrot.slane %v1535_v16, 2  ;;  %v1481_v61 = vsel %vm1457_vm7, %v1408_v56, -1e+30  ;;  %v1412_v15 = vadd.f32 %v1411_v0, %v3685_v22 }
 0x1de   : > { %v1656_v31 = vpack.c.bf16 %v1640_v5, %v1640_v5  ;;  %v1641_v25 = vmax.f32 %v1625_v41, 0.0  ;;  %v1541_v49 = vrot.slane %v1540_v26, 4  ;;  %v1547_v29 = vmax.f32 %v1479_v63, %v1481_v61  ;;  %v1413_v21 = vpop.f32.mrf.mxu0 }
 0x1df   : > { %v1531_v62 = vrot.slane %v1530_v28, 1  ;;  %v1537_v19 = vmax.f32 %v1535_v16, %v1536_v39  ;;  %v1482_v59 = vsel %vm1454_vm4, %v1412_v15, -1e+30  ;;  %v1414_v3 = vadd.f32 %v1413_v21, %v3689_v40 }
 0x1e0   : > { %v1727_v37 = vunpack.c.l.b16 %v1656_v31  ;;  %v1657_v45 = vpack.c.bf16 %v1641_v25, %v1641_v25  ;;  %v1542_v38 = vmax.f32 %v1540_v26, %v1541_v49  ;;  %v1548_v24 = vrot.slane %v1547_v29, 4  ;;  %v1415_v46 = vpop.f32.mrf.mxu0 }
 0x1e1   : > { %v1532_v1 = vmax.f32 %v1530_v28, %v1531_v62  ;;  %v1538_v7 = vrot.slane %v1537_v19, 1  ;;  %v1483_v22 = vsel %vm1455_vm6, %v1414_v3, -1e+30  ;;  %v1416_v12 = vadd.f32 %v1415_v46, %v3693_v36 }
 0x1e2   : > { %v1741_v13 = vrot.slane %v1727_v37, 7  ;;  %v1728_v42 = vunpack.c.l.b16 %v1657_v45  ;;  %v1543_v50 = vrot.slane %v1542_v38, 2  ;;  %v1549_v44 = vmax.f32 %v1547_v29, %v1548_v24  ;;  %v1417_v58 = vpop.f32.mrf.mxu0 }
 0x1e3   : > { %v1626_v33 = vadd.f32 %v3638_v55, %v1532_v1  ;;  %v1539_v40 = vmax.f32 %v1537_v19, %v1538_v7  ;;  %v1484_v53 = vsel %vm1456_vm5, %v1416_v12, -1e+30  ;;  %v1418_v17 = vadd.f32 %v1417_v58, %v3697_v60 }
 0x1e4   : > { %v3792_v63 = vsel %vm1742_vm8, %v1741_v13, %v1725_v11  ;;  %v3794_v6 = vrot.slane %v1728_v42, 7  ;;  %v1544_v9 = vmax.f32 %v1542_v38, %v1543_v50  ;;  %v1550_v36 = vrot.slane %v1549_v44, 2  ;;  %v1421_v16 = vpop.f32.mrf.mxu0 }
 0x1e5   : > { %v1642_v54 = vmax.f32 %v1626_v33, 0.0  ;;  %v1627_v56 = vadd.f32 %v3645_v52, %v1539_v40  ;;  %v1554_v5 = vmax.f32 %v1482_v59, %v1484_v53  ;;  %v1485_v41 = vsel %vm1457_vm7, %v1418_v17, -1e+30 }
 0x1e6   : > { %v1545_v26 = vrot.slane %v1544_v9, 1  ;;  %v1551_v0 = vmax.f32 %v1549_v44, %v1550_v36  ;;  %v1561_v28 = vmax.f32 %v1483_v22, %v1485_v41  ;;  %v1422_v60 = vadd.f32 %v1421_v16, %v3701_v8  ;;  %v1423_v39 = vpop.f32.mrf.mxu0 }
 0x1e7   : > { %v1658_v11 = vpack.c.bf16 %v1642_v54, %v1642_v54  ;;  %v1643_v61 = vmax.f32 %v1627_v56, 0.0  ;;  %v1555_v15 = vrot.slane %v1554_v5, 4  ;;  %v1424_v31 = vadd.f32 %v1423_v39, %v3709_v32 }
 0x1e8   : > { %v1546_v25 = vmax.f32 %v1544_v9, %v1545_v26  ;;  %v1552_v49 = vrot.slane %v1551_v0, 1  ;;  %v1562_v29 = vrot.slane %v1561_v28, 4  ;;  %v1486_v21 = vsel %vm1454_vm4, %v1422_v60, -1e+30  ;;  %v1425_v62 = vpop.f32.mrf.mxu0 }
 0x1e9   : > { %v1729_v19 = vunpack.c.l.b16 %v1658_v11  ;;  %v1659_v59 = vpack.c.bf16 %v1643_v61, %v1643_v61  ;;  %v1556_v3 = vmax.f32 %v1554_v5, %v1555_v15  ;;  %v1487_v37 = vsel %vm1455_vm6, %v1424_v31, -1e+30 }
 0x1ea   : > { %v1628_v8 = vadd.f32 %v3638_v55, %v1546_v25  ;;  %v1553_v45 = vmax.f32 %v1551_v0, %v1552_v49  ;;  %v1563_v38 = vmax.f32 %v1561_v28, %v1562_v29  ;;  %v1426_v32 = vadd.f32 %v1425_v62, %v3713_v57  ;;  %v1427_v24 = vpop.f32.mrf.mxu0 }
 0x1eb   : > { %v1744_v46 = vrot.slane %v1729_v19, 6  ;;  %v1730_v1 = vunpack.c.l.b16 %v1659_v59  ;;  %v1557_v7 = vrot.slane %v1556_v3, 2  ;;  %v1428_v22 = vadd.f32 %v1427_v24, %v3717_v4 }
 0x1ec   : > { %v1644_v12 = vmax.f32 %v1628_v8, 0.0  ;;  %v1629_v13 = vadd.f32 %v3645_v52, %v1553_v45  ;;  %v1564_v42 = vrot.slane %v1563_v38, 2  ;;  %v1488_v50 = vsel %vm1456_vm5, %v1426_v32, -1e+30  ;;  %v1431_v44 = vpop.f32.mrf.mxu0 }
 0x1ed   : > { %v3811_v58 = vrot.slane %v1730_v1, 6  ;;  %v1558_v33 = vmax.f32 %v1556_v3, %v1557_v7  ;;  %v1568_v40 = vmax.f32 %v1486_v21, %v1488_v50  ;;  %v1489_v57 = vsel %vm1457_vm7, %v1428_v22, -1e+30 }
 0x1ee   : > { %v1660_v53 = vpack.c.bf16 %v1644_v12, %v1644_v12  ;;  %v1645_v17 = vmax.f32 %v1629_v13, 0.0  ;;  %v1565_v9 = vmax.f32 %v1563_v38, %v1564_v42  ;;  %v1575_v36 = vmax.f32 %v1487_v37, %v1489_v57  ;;  %v1433_v4 = vpop.f32.mrf.mxu0 }
 0x1ef   : > { %v1559_v16 = vrot.slane %v1558_v33, 1  ;;  %v1569_v54 = vrot.slane %v1568_v40, 4  ;;  %v1432_v56 = vadd.f32 %v1431_v44, %v3725_v51  ;;  %v1434_v5 = vadd.f32 %v1433_v4, %v3729_v20 }
 0x1f0   : > { %v1731_v41 = vunpack.c.l.b16 %v1660_v53  ;;  %v1661_v26 = vpack.c.bf16 %v1645_v17, %v1645_v17  ;;  %v1566_v0 = vrot.slane %v1565_v9, 1  ;;  %v1576_v28 = vrot.slane %v1575_v36, 4  ;;  %v1435_v60 = vpop.f32.mrf.mxu0 }
 0x1f1   : > { %v1560_v39 = vmax.f32 %v1558_v33, %v1559_v16  ;;  %v1570_v11 = vmax.f32 %v1568_v40, %v1569_v54  ;;  %v1490_v61 = vsel %vm1454_vm4, %v1432_v56, -1e+30  ;;  %v1491_v15 = vsel %vm1455_vm6, %v1434_v5, -1e+30 }
 0x1f2   : > { %v1747_v31 = vrot.slane %v1731_v41, 5  ;;  %v1732_v25 = vunpack.c.l.b16 %v1661_v26  ;;  %v1567_v49 = vmax.f32 %v1565_v9, %v1566_v0  ;;  %v1577_v29 = vmax.f32 %v1575_v36, %v1576_v28  ;;  %v1437_v51 = vpop.f32.mrf.mxu0 }
 0x1f3   : > { %v1630_v20 = vadd.f32 %v3638_v55, %v1560_v39  ;;  %v1571_v21 = vrot.slane %v1570_v11, 2  ;;  %v1436_v62 = vadd.f32 %v1435_v60, %v3733_v2  ;;  %v1438_v19 = vadd.f32 %v1437_v51, %v3736_v10 }
 0x1f4   : > { %v3824_v59 = vrot.slane %v1732_v25, 5  ;;  %v1631_v3 = vadd.f32 %v3645_v52, %v1567_v49  ;;  %v1578_v37 = vrot.slane %v1577_v29, 2  ;;  %v1441_v8 = vpop.f32.mrf.mxu0  ;;  %v1746_v45 = vsel %vm1745_vm9, %v1744_v46, %v3792_v63 }
 0x1f5   : > { %v1646_v38 = vmax.f32 %v1630_v20, 0.0  ;;  %v1572_v32 = vmax.f32 %v1570_v11, %v1571_v21  ;;  %v1492_v24 = vsel %vm1456_vm5, %v1436_v62, -1e+30  ;;  %v1493_v2 = vsel %vm1457_vm7, %v1438_v19, -1e+30 }
 0x1f6   : > { %v1647_v1 = vmax.f32 %v1631_v3, 0.0  ;;  %v1579_v10 = vmax.f32 %v1577_v29, %v1578_v37  ;;  %v1582_v7 = vmax.f32 %v1490_v61, %v1492_v24  ;;  %v1589_v22 = vmax.f32 %v1491_v15, %v1493_v2  ;;  %v1443_v12 = vpop.f32.mrf.mxu0 }
 0x1f7   : > { %v1662_v13 = vpack.c.bf16 %v1646_v38, %v1646_v38  ;;  %v1573_v42 = vrot.slane %v1572_v32, 1  ;;  %v1442_v50 = vadd.f32 %v1441_v8, %v3739_v18  ;;  %v1444_v63 = vadd.f32 %v1443_v12, %v3743_v48 }
 0x1f8   : > { %v1663_v46 = vpack.c.bf16 %v1647_v1, %v1647_v1  ;;  %v1580_v44 = vrot.slane %v1579_v10, 1  ;;  %v1583_v33 = vrot.slane %v1582_v7, 4  ;;  %v1590_v40 = vrot.slane %v1589_v22, 4  ;;  %v1445_v57 = vpop.f32.mrf.mxu0 }
 0x1f9   : > { %v1733_v53 = vunpack.c.l.b16 %v1662_v13  ;;  %v1574_v17 = vmax.f32 %v1572_v32, %v1573_v42  ;;  %v1494_v9 = vsel %vm1454_vm4, %v1442_v50, -1e+30  ;;  %v1495_v36 = vsel %vm1455_vm6, %v1444_v63, -1e+30 }
 0x1fa   : > { %v1734_v4 = vunpack.c.l.b16 %v1663_v46  ;;  %v1581_v16 = vmax.f32 %v1579_v10, %v1580_v44  ;;  %v1584_v54 = vmax.f32 %v1582_v7, %v1583_v33  ;;  %v1591_v56 = vmax.f32 %v1589_v22, %v1590_v40  ;;  %v1447_v18 = vpop.f32.mrf.mxu0 }
 0x1fb   : > { %v1750_v5 = vrot.slane %v1733_v53, 4  ;;  %v1632_v48 = vadd.f32 %v3638_v55, %v1574_v17  ;;  %v1446_v41 = vadd.f32 %v1445_v57, %v3758_v47  ;;  %v1448_v26 = vadd.f32 %v1447_v18, %v3762_v30 }
 0x1fc   : > { %v1768_v0 = vrot.slane %v1734_v4, 4  ;;  %v1633_v28 = vadd.f32 %v3645_v52, %v1581_v16  ;;  %v1585_v23 = vrot.slane %v1584_v54, 2  ;;  %v1592_v60 = vrot.slane %v1591_v56, 2 }
 0x1fd   : > { %v1648_v39 = vmax.f32 %v1632_v48, 0.0  ;;  %v1496_v27 = vsel %vm1456_vm5, %v1446_v41, -1e+30  ;;  %v1497_v11 = vsel %vm1457_vm7, %v1448_v26, -1e+30  ;;  %v1749_v61 = vsel %vm1748_vm10, %v1747_v31, %v1746_v45 }
 0x1fe   : > { %v1649_v15 = vmax.f32 %v1633_v28, 0.0  ;;  %v1586_v25 = vmax.f32 %v1584_v54, %v1585_v23  ;;  %v1593_v49 = vmax.f32 %v1591_v56, %v1592_v60  ;;  %v1596_v47 = vmax.f32 %v1494_v9, %v1496_v27  ;;  %v2581_v27 = vld [vmem:[#allocation10 + $0x38] sm:$0xff]  }
 0x1ff   : > { %v1664_v29 = vpack.c.bf16 %v1648_v39, %v1648_v39  ;;  %v1603_v30 = vmax.f32 %v1495_v36, %v1497_v11  ;;  %v1752_v51 = vsel %vm1751_vm11, %v1750_v5, %v1749_v61  ;;  %v1763_v20 = vsel %vm1742_vm8, %v3794_v6, %v1726_v43  ;;  %v2583_v61 = vld [vmem:[#allocation10 + $0x28] sm:$0xff]  }
 0x200   : > { %v1665_v14 = vpack.c.bf16 %v1649_v15, %v1649_v15  ;;  %v1587_v21 = vrot.slane %v1586_v25, 1  ;;  %v1594_v62 = vrot.slane %v1593_v49, 1  ;;  %v1597_v34 = vrot.slane %v1596_v47, 4  ;;  %v2584_v15 = vld [vmem:[#allocation10 + $0x20] sm:$0xff]  }
 0x201   : > { %v1735_v19 = vunpack.c.l.b16 %v1664_v29  ;;  %v1604_v3 = vrot.slane %v1603_v30, 4  ;;  %v1765_v31 = vsel %vm1745_vm9, %v3811_v58, %v1763_v20  ;;  %v2588_v29 = vld [vmem:[#allocation10] sm:$0xff]  }
 0x202   : > { %v1736_v37 = vunpack.c.l.b16 %v1665_v14  ;;  %v1588_v8 = vmax.f32 %v1586_v25, %v1587_v21  ;;  %v1595_v45 = vmax.f32 %v1593_v49, %v1594_v62  ;;  %v1598_v38 = vmax.f32 %v1596_v47, %v1597_v34  ;;  %v2585_v25 = vld [vmem:[#allocation10 + $0x18] sm:$0xff]   ;;  %v2586_v49 = vld [vmem:[#allocation10 + $0x10] sm:$0xff]   ;;  %v2587_v47 = vld [vmem:[#allocation10 + $0x8] sm:$0xff]  }
 0x203   : > { %v1753_v32 = vrot.slane %v1735_v19, 3  ;;  %v1605_v24 = vmax.f32 %v1603_v30, %v1604_v3  ;;  %v1767_v35 = vsel %vm1748_vm10, %v3824_v59, %v1765_v31  ;;  %v2275_v31 = vld [vmem:[%s3933_s7] ss:$0 sm:$0xff] }
 0x204   : > { %v1634_v43 = vadd.f32 %v3638_v55, %v1588_v8  ;;  %v1635_v6 = vadd.f32 %v3645_v52, %v1595_v45  ;;  %v1599_v2 = vrot.slane %v1598_v38, 2  ;;  %v1769_v1 = vsel %vm1751_vm11, %v1768_v0, %v1767_v35 }
 0x205   : > { %v1606_v10 = vrot.slane %v1605_v24, 2  ;;  %v1755_v7 = vsel %vm1754_vm12, %v1753_v32, %v1752_v51  ;;  %v1770_v58 = vrot.slane %v1736_v37, 3  ;;  %v2258_v51 = vld [vmem:[%s3931_s5] ss:$0 sm:$0xff] }
 0x206   : > { %v1650_v22 = vmax.f32 %v1634_v43, 0.0  ;;  %v1651_v12 = vmax.f32 %v1635_v6, 0.0  ;;  %v1600_v13 = vmax.f32 %v1598_v38, %v1599_v2 }
 0x207   : > { %v1607_v42 = vmax.f32 %v1605_v24, %v1606_v10  ;;  %v1771_v50 = vsel %vm1754_vm12, %v1770_v58, %v1769_v1 }
 0x208   : > { %v1666_v63 = vpack.c.bf16 %v1650_v22, %v1650_v22  ;;  %v1601_v46 = vrot.slane %v1600_v13, 1  ;;  %v1667_v59 = vpack.c.bf16 %v1651_v12, %v1651_v12 }
 0x209   : > { %v1608_v44 = vrot.slane %v1607_v42, 1 }
 0x20a   : > { %v1737_v33 = vunpack.c.l.b16 %v1666_v63  ;;  %v1602_v40 = vmax.f32 %v1600_v13, %v1601_v46  ;;  %v1738_v57 = vunpack.c.l.b16 %v1667_v59 }
 0x20b   : > { %v1609_v53 = vmax.f32 %v1607_v42, %v1608_v44 }
 0x20c   : > { %v1756_v17 = vrot.slane %v1737_v33, 2  ;;  %v1636_v9 = vadd.f32 %v3638_v55, %v1602_v40  ;;  %v1772_v36 = vrot.slane %v1738_v57, 2  ;;  %v3991_v55 = vmov 0.0  }
 0x20d   : > { %v1637_v4 = vadd.f32 %v3645_v52, %v1609_v53  ;;  %v2582_v52 = vld [vmem:[#allocation10 + $0x30] sm:$0xff]  }
 0x20e   : > { %v1652_v16 = vmax.f32 %v1636_v9, 0.0  ;;  %v1758_v54 = vsel %vm1757_vm13, %v1756_v17, %v1755_v7  ;;  %v1773_v56 = vsel %vm1757_vm13, %v1772_v36, %v1771_v50 }
 0x20f   : > { %v1653_v18 = vmax.f32 %v1637_v4, 0.0 }
 0x210   : > { %v1668_v5 = vpack.c.bf16 %v1652_v16, %v1652_v16 }
 0x211   : > { %v1669_v48 = vpack.c.bf16 %v1653_v18, %v1653_v18 }
 0x212   : > { %v1739_v41 = vunpack.c.l.b16 %v1668_v5 }
 0x213   : > { %v1740_v26 = vunpack.c.l.b16 %v1669_v48 }
 0x214   : > { %v1759_v0 = vrot.slane %v1739_v41, 1 }
 0x215   : > { %v1774_v28 = vrot.slane %v1740_v26, 1 }
 0x216   : > { %v1761_v23 = vsel %vm1760_vm14, %v1759_v0, %v1758_v54 }
 0x217   : > { %v1775_v60 = vsel %vm1760_vm14, %v1774_v28, %v1773_v56  ;;  %v1776_v11 = vpack.c.b16 %v1761_v23, %v1761_v23 }
 0x218   : > { %v1777_v39 = vpack.c.b16 %v1775_v60, %v1775_v60 }
 0x21a   : > { %1908 = vmatprep.mubr.bf16.mxu1 %v1777_v39 }
 0x21b   : > { %1909 = vmatmul.mubr.bf16.vlgmr.msra.gmra.mxu1 %v1776_v11 }
 0x21c   : > { %2322 = vmatpush3.bf16.msra.mxu1 %v2581_v27  ;;  %2337 = vmatprep.mubr.msk.bf16.mxu1 %vm2816_vm15, %v3991_v55 }
 0x21d   : > { %2323 = vmatprep.subr.bf16.mxu1 %v3991_v55 }
 0x220   : > { %2324 = vmatpush3.bf16.msra.mxu1 %v2582_v52 }
 0x221   : > { %2325 = vmatprep.subr.bf16.mxu1 %v3991_v55 }
 0x224   : > { %2326 = vmatpush3.bf16.msra.mxu1 %v2583_v61 }
 0x225   : > { %2327 = vmatprep.subr.bf16.mxu1 %v3991_v55 }
 0x228   : > { %2328 = vmatpush3.bf16.msra.mxu1 %v2584_v15 }
 0x229   : > { %2329 = vmatprep.subr.bf16.mxu1 %v3991_v55 }
 0x22c   : > { %2330 = vmatpush3.bf16.msra.mxu1 %v2585_v25 }
 0x22d   : > { %2331 = vmatprep.subr.bf16.mxu1 %v3991_v55 }
 0x230   : > { %2332 = vmatpush3.bf16.msra.mxu1 %v2586_v49 }
 0x231   : > { %2333 = vmatprep.subr.bf16.mxu1 %v3991_v55 }
 0x234   : > { %2334 = vmatpush3.bf16.msra.mxu1 %v2587_v47 }
 0x235   : > { %2335 = vmatprep.subr.bf16.mxu1 %v3991_v55 }
 0x238   : > { %2336 = vmatpush3.bf16.msra.mxu1 %v2588_v29 }
 0x2db   : > { %v2306_v30 = vpop.f32.mrf.mxu1 }
 0x2dd   : > { %v2307_v20 = vpop.f32.mrf.mxu1 }
 0x2de   : > { %v2308_v14 = vadd.f32 %v2307_v20, %v2306_v30 }
 0x2df   : > { %v2309_v21 = vpop.f32.mrf.mxu1 }
 0x2e0   : > { %v1911_v62 = vadd.f32 %v2308_v14, %v2258_v51 }
 0x2e1   : > { %v2310_v34 = vpop.f32.mrf.mxu1 }
 0x2e2   : > { %v1916_v19 = vmax.f32 %v1911_v62, 0.0 }
 0x2e4   : > { %v1917_v3 = vpack.c.bf16 %v1916_v19, %v1916_v19 }
 0x2e6   : > { %2338 = vmatmul.mubr.bf16.vlgmr.msra.gmra.mxu1 %v1917_v3 }
 0x3a6   : > { %v2023_v37 = vpop.f32.mrf.mxu1 }
 0x3a7   : > { %v2024_v8 = vadd.f32 %v2275_v31, %v2023_v37 }
 0x3a8   : > { %v2339_v45 = vpop.f32.mrf.mxu1 }
 0x3a9   : > { %2029 = vst [vmem:[%s382_s23] sm:$0xff] %v2024_v8 }
 0x3aa   : > { %v2026_v38 = vpop.f32.mrf.mxu1 }
 0x3ab   : > { %2742 = shalt.err (!%p2739_p6)
}
 0x3ac   : > { %s2743_s14 = scalar_lea.hbm %s3883_s22, 128  ;;  %s2747_s16 = scalar_lea.hbm %s3934_s8, 256 }
 0x3ad   : > { %p2744_p2 = scmp.ne.s32.totalorder %s3883_s22, %s2743_s14  ;;  %p2748_p0 = scmp.lt.s32.totalorder %s3883_s22, %s3934_s8 }
 0x3ae   : > { %p2749_p11 = scmp.lt.s32.totalorder %s2747_s16, %s2743_s14 }
 0x3af   : > { %p2745_p4 = pnand %p2744_p2, %p3992_p7 }
 0x3b0   : > { %p2750_p3 = por %p2749_p11, %p2748_p0 }
 0x3b1   : > { %p2746_p8 = pneg %p2745_p4 }
 0x3b3   : > { %p2751_p12 = pnand %p2750_p3, %p2746_p8 }
 0x3b5   : > { %2754 = shalt.err (!%p2751_p12)
}
 0x3b6   : > { %2359 = dma.vmem_to_hbm [thread:$0]  (%p3992_p7), %s3885_s26, 128, %s3883_s22, %s2031_s10   ;;  %v2340_v32 = vpop.f32.mrf.mxu1 }
 0x3b7 PF: > { %s2056_s23 = sand.u32 1, %s2789_s27   ;;  %p3993_p9 = scmp.ne.s32.totalorder %s3947_s12, 0 }
 0x3b8   : > { %p3994_p13 = scmp.ge.s32.totalorder %s2801_s30, 2  ;;  %s2057_s24 = scalar_lea.sflag [#allocation4], %s2056_s23 }
 0x3ba   : > { %p2379_p5 = pnand %p3994_p13, %p3993_p9 }
 0x3bc   : > { %p2380_p10 = pneg %p2379_p5 }
 0x3be   : > { %2784 = dma.done.wait (%p2380_p10), %s2057_s24, 128  }
 0x3bf   : > { %2786 = vsyncadd (%p2380_p10), %s2057_s24, 4294967168  ;;  %p23_p1 = scmp.ge.s32.totalorder %s2957_s17, 4   ;;  %s3995_s27 = smov %s2793_s28 }
 0x3c0   : > { %s3996_s28 = smov %s2797_s29  ;;  %s3997_s29 = smov %s2973_s21 }
 0x3c1   : > { %s3998_s30 = smov %s2957_s17  ;;  %25 = sbr.rel (!%p23_p1) target bundleno = 10 (0xa), region = 113 }
 0x3c6   :  { %2062 = vsyncpa [#allocation3], 1 }
 0x3c7   :  { %2064 = vsyncpa [#allocation3 + $0x1], 1 }
 0x3c8   :  { %2065 = vsyncpa [#allocation6], 1 }
 0x3c9   :  { %2066 = vsyncpa [#allocation9], 1 }
 0x3ca   :  { %2067 = vsyncpa [#allocation4], 1 }
 0x3cb   :  { %2069 = vsyncpa [#allocation4 + $0x1], 1 }

</bundles_post_ra>
